<compile_context>
chip_gen: v6e
topology: v6e:2x2x1
jax: 0.10.0
libtpu: 0.0.40
codegen_flags: <defaults>
</compile_context>

<pallas_src>
import jax
import jax.numpy as jnp
from jax.experimental import pallas as pl
from jax.experimental.pallas import tpu as pltpu


def _decoder_kernel(
    # inputs (VMEM resident, read inside the loop — no blanket vreg hoists)
    x_all_ref,    # (T, B, 2H)        y_emb @ W.T + b
    xx_all_ref,   # (T, B, H)         y_emb @ Wx.T + bx
    ymask_ref,    # (T, B, H)         y_mask broadcast to H lanes
    attn_ref,     # (B, 2*Ts*C + Ts)  [pctx_flat | x_mask_flat | x_mask_bt]
    ctx_cat_ref,  # (B, Ts, 3H + C)   [ctx @ [Wc.T|Wcx.T] | ctx]
    init_h_ref,   # (B, H)
    wslab_ref,    # (4H, Ts*C + 2H)   rows: U.T | Ux.T | [tile(Wcomb.T,Ts)|U_nl.T] | Ux_nl.T
    uatt_ref,     # (Ts*C, Ts)        block-diagonal U_att
    bnl_ref,      # (1, 2H)
    bxnl_ref,     # (1, H)
    # outputs
    hs_ref,       # (T, B, H)
    atts_ref,     # (T, B, C)
    dists_ref,    # (T, B, Ts)
):
    T_dec = x_all_ref.shape[0]
    H = x_all_ref.shape[2] // 2
    Ts = dists_ref.shape[-1]
    SC = Ts * atts_ref.shape[-1]          # Ts * C

    def step(i, h_prev):
        x_i = x_all_ref[i]                # (B, 2H)
        xx_i = xx_all_ref[i]              # (B, H)
        ym = ymask_ref[i]                 # (B, H)  pre-broadcast mask
        ym1 = 1.0 - ym                    # computed once, reused for both gates

        # --- first GRU cell ---
        tmp1 = jax.nn.sigmoid(
            jnp.dot(h_prev, wslab_ref[0:H, 0:2 * H],
                    preferred_element_type=jnp.float32) + x_i)
        r1 = tmp1[:, :H]
        u1 = tmp1[:, H:]
        h1 = jnp.tanh(
            jnp.dot(h_prev * r1, wslab_ref[H:2 * H, 0:H],
                    preferred_element_type=jnp.float32) + xx_i)
        h1 = u1 * h_prev + (1.0 - u1) * h1
        h1 = ym * h1 + ym1 * h_prev

        # --- attention (batch-major, lane dense) ---
        # One fused projection: [tile(W_comb_att.T, Ts) | U_nl.T]
        hproj = jnp.dot(h1, wslab_ref[2 * H:3 * H, :],
                        preferred_element_type=jnp.float32)          # (B, SC+2H)
        unreg = jnp.tanh(attn_ref[:, 0:SC] + hproj[:, :SC]) \
            * attn_ref[:, SC:2 * SC]                                  # (B, SC)
        # Per-source-position C-reduction folded into one MXU matmul.
        scores = jnp.dot(unreg, uatt_ref[...],
                         preferred_element_type=jnp.float32)          # (B, Ts)
        m = jnp.max(scores, axis=-1, keepdims=True)
        wa = jnp.exp(scores - m) * attn_ref[:, 2 * SC:2 * SC + Ts]
        denom = jnp.sum(wa, axis=-1, keepdims=True)
        # NOTE: matches reference semantics; assumes >=1 unmasked source
        # position per batch column (otherwise the reference also hits 0/0).
        wa = wa * pl.reciprocal(denom, approx=True)                   # (B, Ts)

        # --- attended context + its fused (Wc|Wcx) projection, one batched dot ---
        res = jnp.einsum('bqs,bsk->bqk', wa[:, None, :], ctx_cat_ref[...],
                         preferred_element_type=jnp.float32)[:, 0, :]  # (B, 3H+C)
        a_proj = res[:, :3 * H]
        atted = res[:, 3 * H:]

        # --- second GRU cell ---
        tmp2 = jax.nn.sigmoid(a_proj[:, :2 * H] + hproj[:, SC:] + bnl_ref[...])
        r2 = tmp2[:, :H]
        u2 = tmp2[:, H:]
        h2 = jnp.tanh(
            a_proj[:, 2 * H:]
            + jnp.dot(h1 * r2, wslab_ref[3 * H:4 * H, 0:H],
                      preferred_element_type=jnp.float32)
            + bxnl_ref[...])
        h2 = u2 * h1 + (1.0 - u2) * h2
        h2 = ym * h2 + ym1 * h1

        hs_ref[i] = h2
        atts_ref[i] = atted
        dists_ref[i] = wa                 # already (B, Ts) lane-major: no transpose
        return h2

    # Short, static trip count: fully unrolled so the scheduler sees it all.
    jax.lax.fori_loop(0, T_dec, step, init_h_ref[...], unroll=True)


def gru_attention_decoder(params, y_emb, context, init_state, x_mask, y_mask, xid):
    T_dec, B, E = y_emb.shape
    Ts, _, C = context.shape
    H = init_state.shape[-1]
    P = jax.lax.Precision.HIGHEST
    SC = Ts * C

    # Hoisted non-recurrent projections (large batched MXU matmuls).
    x_all = (jnp.dot(y_emb.reshape(T_dec * B, E), params["W"].T, precision=P)
             + params["b"][0]).reshape(T_dec, B, 2 * H)
    xx_all = (jnp.dot(y_emb.reshape(T_dec * B, E), params["Wx"].T, precision=P)
              + params["bx"][0]).reshape(T_dec, B, H)
    pctx = (jnp.dot(context.reshape(Ts * B, C), params["Wc_att"].T, precision=P)
            + params["b_att"][0]).reshape(Ts, B, C)

    # Batch-major, lane-dense attention operands (one concatenated row per batch).
    ctx_b = jnp.transpose(context, (1, 0, 2))                        # (B, Ts, C)
    pctx_flat = jnp.transpose(pctx, (1, 0, 2)).reshape(B, SC)        # (B, Ts*C)
    xm_b = jnp.transpose(x_mask[:, :, 0], (1, 0))                    # (B, Ts)
    xm_flat = jnp.broadcast_to(xm_b[:, :, None], (B, Ts, C)).reshape(B, SC)
    attn_in = jnp.concatenate([pctx_flat, xm_flat, xm_b], axis=-1)   # (B, 2*Ts*C+Ts)

    # (Wc|Wcx) projection of the context, hoisted out of the recurrence:
    #   atted @ [Wc.T|Wcx.T] == wa . (ctx @ [Wc.T|Wcx.T])
    Wc_fused = jnp.concatenate([params["Wc"].T, params["Wcx"].T], axis=1)   # (C, 3H)
    ctx_proj = jnp.einsum('bsc,ch->bsh', ctx_b, Wc_fused, precision=P)      # (B, Ts, 3H)
    ctx_cat = jnp.concatenate([ctx_proj, ctx_b], axis=-1)                   # (B, Ts, 3H+C)

    # Recurrent weight slab: row blocks are sublane aligned (multiples of H),
    # every column slice starts at lane 0, so in-kernel slices are cheap.
    W1 = jnp.concatenate([jnp.tile(params["W_comb_att"].T, (1, Ts)),
                          params["U_nl"].T], axis=1)                 # (H, Ts*C+2H)
    width = SC + 2 * H
    pad = lambda a: jnp.pad(a, ((0, 0), (0, width - a.shape[1])))
    W_slab = jnp.concatenate([pad(params["U"].T), pad(params["Ux"].T),
                              W1, pad(params["Ux_nl"].T)], axis=0)   # (4H, Ts*C+2H)

    # Block-diagonal U_att folds the per-position C-reduction into one matmul,
    # leaving scores directly lane-major as (B, Ts).
    Uatt_bd = jnp.kron(jnp.eye(Ts, dtype=jnp.float32), params["U_att"].T)   # (Ts*C, Ts)

    ym_b = jnp.broadcast_to(y_mask, (T_dec, B, H))                   # dense gate mask

    vmem = pl.BlockSpec(memory_space=pltpu.MemorySpace.VMEM)
    out_shapes = (
        jax.ShapeDtypeStruct((T_dec, B, H), jnp.float32),    # hs
        jax.ShapeDtypeStruct((T_dec, B, C), jnp.float32),    # atts
        jax.ShapeDtypeStruct((T_dec, B, Ts), jnp.float32),   # dists (lane-dense)
    )

    hs, atts, dists = pl.pallas_call(
        _decoder_kernel,
        out_shape=out_shapes,
        in_specs=[vmem] * 10,
        out_specs=(vmem, vmem, vmem),
        compiler_params=pltpu.CompilerParams(vmem_limit_bytes=32 * 1024 * 1024),
    )(x_all, xx_all, ym_b, attn_in, ctx_cat, init_state, W_slab, Uatt_bd,
      params["b_nl"], params["bx_nl"])

    ss = hs   # identical to hs by construction (matches the reference module)
    xids = jnp.broadcast_to(jnp.transpose(xid, (1, 0))[None], (T_dec, B, Ts))
    return hs, ss, atts, dists, xids


def _reference(params, y_emb, context, init_state, x_mask, y_mask):
    """Pure-JAX re-implementation of the PyTorch forward (for validation)."""
    P = jax.lax.Precision.HIGHEST
    H = init_state.shape[-1]

    def lin(x, w, b=None):
        y = jnp.dot(x, w.T, precision=P)
        return y if b is None else y + b

    pctx = lin(context, params["Wc_att"], params["b_att"][0])
    x = lin(y_emb, params["W"], params["b"][0])
    xx = lin(y_emb, params["Wx"], params["bx"][0])
    hidden = init_state
    hs, atts, dists = [], [], []
    for i in range(y_emb.shape[0]):
        tmp1 = jax.nn.sigmoid(lin(hidden, params["U"]) + x[i])
        r1, u1 = tmp1[:, :H], tmp1[:, H:]
        h1 = jnp.tanh(lin(hidden * r1, params["Ux"]) + xx[i])
        h1 = u1 * hidden + (1.0 - u1) * h1
        ym = y_mask[i]
        h1 = ym * h1 + (1.0 - ym) * hidden
        unreg = jnp.tanh(pctx + lin(h1, params["W_comb_att"])[None]) * x_mask
        unreg = lin(unreg, params["U_att"])
        wa = jnp.exp(unreg - jnp.max(unreg, axis=0, keepdims=True)) * x_mask
        wa = wa / jnp.sum(wa, axis=0, keepdims=True)
        atted = jnp.sum(wa * context, axis=0)
        tmp2 = jax.nn.sigmoid(lin(atted, params["Wc"]) + lin(h1, params["U_nl"])
                              + params["b_nl"][0])
        r2, u2 = tmp2[:, :H], tmp2[:, H:]
        h2 = jnp.tanh(lin(atted, params["Wcx"]) + lin(h1 * r2, params["Ux_nl"])
                      + params["bx_nl"][0])
        h2 = u2 * h1 + (1.0 - u2) * h2
        h2 = ym * h2 + (1.0 - ym) * h1
        hidden = h2
        hs.append(h2)
        atts.append(atted)
        dists.append(wa[:, :, 0].T)
    return (jnp.stack(hs), jnp.stack(hs), jnp.stack(atts), jnp.stack(dists))


def init_params(key, E, H, C):
    # TODO(synk): original uses orthogonal init; deterministic scaled normals suffice
    # for a synthetic kernel (init does not affect forward-pass semantics).
    shapes = {
        "W": (2 * H, E), "U": (2 * H, H), "b": (1, 2 * H),
        "Wx": (H, E), "Ux": (H, H), "bx": (1, H),
        "Wc_att": (C, C), "b_att": (1, C), "W_comb_att": (C, H), "U_att": (1, C),
        "U_nl": (2 * H, H), "b_nl": (1, 2 * H), "Ux_nl": (H, H), "bx_nl": (1, H),
        "Wc": (2 * H, C), "Wcx": (H, C),
    }
    keys = jax.random.split(key, len(shapes))
    return {name: 0.1 * jax.random.normal(k, shp, jnp.float32)
            for k, (name, shp) in zip(keys, shapes.items())}


if __name__ == "__main__":
    B, E, H, C = 2, 8, 32, 16
    T_dec, T_src = 4, 8

    root = jax.random.PRNGKey(0)
    kp, k1, k2, k3, k4, k5, k6 = jax.random.split(root, 7)

    params = init_params(kp, E, H, C)
    y_emb = jax.random.normal(k1, (T_dec, B, E), jnp.float32)
    context = jax.random.normal(k2, (T_src, B, C), jnp.float32)
    init_state = jax.random.normal(k3, (B, H), jnp.float32)
    x_mask = (jax.random.uniform(k4, (T_src, B, 1)) > 0.2).astype(jnp.float32)
    x_mask = x_mask.at[0].set(1.0)   # keep at least one unmasked source position
    y_mask = (jax.random.uniform(k5, (T_dec, B, 1)) > 0.2).astype(jnp.float32)
    xid = jax.random.randint(k6, (T_src, B), 0, 100).astype(jnp.int32)

    decoder = jax.jit(gru_attention_decoder)
    outs = decoder(params, y_emb, context, init_state, x_mask, y_mask, xid)
    outs = jax.block_until_ready(outs)

    ref = _reference(params, y_emb, context, init_state, x_mask, y_mask)
    for got, want in zip(outs[:4], ref):
        assert got.shape == want.shape, (got.shape, want.shape)
        assert jnp.allclose(got, want, rtol=2e-3, atol=2e-3), \
            float(jnp.max(jnp.abs(got - want)))
    xids_ref = jnp.broadcast_to(xid.T[None], (T_dec, B, T_src))
    assert jnp.array_equal(outs[4], xids_ref)

    print("KERNEL_OK")
</pallas_src>

<mosaic_0001>
module attributes {stable_mosaic.version = 11 : i64} {
  func.func @_decoder_kernel(%arg0: memref<4x2x64xf32, #tpu.memory_space<vmem>>, %arg1: memref<4x2x32xf32, #tpu.memory_space<vmem>>, %arg2: memref<4x2x32xf32, #tpu.memory_space<vmem>>, %arg3: memref<2x264xf32, #tpu.memory_space<vmem>>, %arg4: memref<2x8x112xf32, #tpu.memory_space<vmem>>, %arg5: memref<2x32xf32, #tpu.memory_space<vmem>>, %arg6: memref<128x192xf32, #tpu.memory_space<vmem>>, %arg7: memref<128x8xf32, #tpu.memory_space<vmem>>, %arg8: memref<1x64xf32, #tpu.memory_space<vmem>>, %arg9: memref<1x32xf32, #tpu.memory_space<vmem>>, %arg10: memref<4x2x32xf32, #tpu.memory_space<vmem>>, %arg11: memref<4x2x16xf32, #tpu.memory_space<vmem>>, %arg12: memref<4x2x8xf32, #tpu.memory_space<vmem>>) attributes {dimension_semantics = [], scalar_prefetch = 0 : i64, scratch_operands = 0 : i64, tpu.core_type = #tpu.core_type<tc>} {
    %c0 = arith.constant 0 : index
    %c0_0 = arith.constant 0 : index
    %0 = vector.load %arg5[%c0, %c0_0] : memref<2x32xf32, #tpu.memory_space<vmem>>, vector<2x32xf32>
    %c0_i32 = arith.constant 0 : i32
    %1 = arith.index_cast %c0_i32 : i32 to index
    %c0_1 = arith.constant 0 : index
    %c0_2 = arith.constant 0 : index
    %2 = vector.load %arg0[%1, %c0_1, %c0_2] : memref<4x2x64xf32, #tpu.memory_space<vmem>>, vector<1x2x64xf32>
    %3 = vector.shape_cast %2 : vector<1x2x64xf32> to vector<2x64xf32>
    %4 = arith.index_cast %c0_i32 : i32 to index
    %c0_3 = arith.constant 0 : index
    %c0_4 = arith.constant 0 : index
    %5 = vector.load %arg1[%4, %c0_3, %c0_4] : memref<4x2x32xf32, #tpu.memory_space<vmem>>, vector<1x2x32xf32>
    %6 = vector.shape_cast %5 : vector<1x2x32xf32> to vector<2x32xf32>
    %7 = arith.index_cast %c0_i32 : i32 to index
    %c0_5 = arith.constant 0 : index
    %c0_6 = arith.constant 0 : index
    %8 = vector.load %arg2[%7, %c0_5, %c0_6] : memref<4x2x32xf32, #tpu.memory_space<vmem>>, vector<1x2x32xf32>
    %9 = vector.shape_cast %8 : vector<1x2x32xf32> to vector<2x32xf32>
    %cst = arith.constant 1.000000e+00 : f32
    %10 = vector.broadcast %cst : f32 to vector<2x32xf32>
    %11 = arith.subf %10, %9 : vector<2x32xf32>
    %c0_7 = arith.constant 0 : index
    %c0_8 = arith.constant 0 : index
    %12 = vector.load %arg6[%c0_7, %c0_8] : memref<128x192xf32, #tpu.memory_space<vmem>>, vector<32x64xf32>
    %cst_9 = arith.constant dense<0.000000e+00> : vector<2x64xf32>
    %13 = tpu.matmul %0, %12, %cst_9 {dimension_numbers = #tpu.dot_dimension_numbers<[1], [0], [0], [1], [0, 0, 1, 1], [], []>} : vector<2x32xf32>, vector<32x64xf32>, vector<2x64xf32> -> vector<2x64xf32>
    %14 = arith.addf %13, %3 : vector<2x64xf32>
    %15 = arith.negf %14 : vector<2x64xf32>
    %16 = math.exp %15 : vector<2x64xf32>
    %cst_10 = arith.constant 1.000000e+00 : f32
    %17 = vector.broadcast %cst_10 : f32 to vector<2x64xf32>
    %18 = arith.addf %17, %16 : vector<2x64xf32>
    %19 = arith.divf %17, %18 : vector<2x64xf32>
    %20 = vector.extract_strided_slice %19 {offsets = [0, 0], sizes = [2, 32], strides = [1, 1]} : vector<2x64xf32> to vector<2x32xf32>
    %21 = vector.extract_strided_slice %19 {offsets = [0, 32], sizes = [2, 32], strides = [1, 1]} : vector<2x64xf32> to vector<2x32xf32>
    %22 = arith.mulf %0, %20 : vector<2x32xf32>
    %c32 = arith.constant 32 : index
    %c0_11 = arith.constant 0 : index
    %23 = vector.load %arg6[%c32, %c0_11] : memref<128x192xf32, #tpu.memory_space<vmem>>, vector<32x32xf32>
    %cst_12 = arith.constant dense<0.000000e+00> : vector<2x32xf32>
    %24 = tpu.matmul %22, %23, %cst_12 {dimension_numbers = #tpu.dot_dimension_numbers<[1], [0], [0], [1], [0, 0, 1, 1], [], []>} : vector<2x32xf32>, vector<32x32xf32>, vector<2x32xf32> -> vector<2x32xf32>
    %25 = arith.addf %24, %6 : vector<2x32xf32>
    %26 = math.tanh %25 : vector<2x32xf32>
    %27 = arith.mulf %21, %0 : vector<2x32xf32>
    %cst_13 = arith.constant 1.000000e+00 : f32
    %28 = vector.broadcast %cst_13 : f32 to vector<2x32xf32>
    %29 = arith.subf %28, %21 : vector<2x32xf32>
    %30 = arith.mulf %29, %26 : vector<2x32xf32>
    %31 = arith.addf %27, %30 : vector<2x32xf32>
    %32 = arith.mulf %9, %31 : vector<2x32xf32>
    %33 = arith.mulf %11, %0 : vector<2x32xf32>
    %34 = arith.addf %32, %33 : vector<2x32xf32>
    %c64 = arith.constant 64 : index
    %c0_14 = arith.constant 0 : index
    %35 = vector.load %arg6[%c64, %c0_14] : memref<128x192xf32, #tpu.memory_space<vmem>>, vector<32x192xf32>
    %cst_15 = arith.constant dense<0.000000e+00> : vector<2x192xf32>
    %36 = tpu.matmul %34, %35, %cst_15 {dimension_numbers = #tpu.dot_dimension_numbers<[1], [0], [0], [1], [0, 0, 1, 1], [], []>} : vector<2x32xf32>, vector<32x192xf32>, vector<2x192xf32> -> vector<2x192xf32>
    %c0_16 = arith.constant 0 : index
    %c0_17 = arith.constant 0 : index
    %37 = vector.load %arg3[%c0_16, %c0_17] : memref<2x264xf32, #tpu.memory_space<vmem>>, vector<2x128xf32>
    %38 = vector.extract_strided_slice %36 {offsets = [0, 0], sizes = [2, 128], strides = [1, 1]} : vector<2x192xf32> to vector<2x128xf32>
    %39 = arith.addf %37, %38 : vector<2x128xf32>
    %40 = math.tanh %39 : vector<2x128xf32>
    %c0_18 = arith.constant 0 : index
    %c128 = arith.constant 128 : index
    %41 = vector.load %arg3[%c0_18, %c128] : memref<2x264xf32, #tpu.memory_space<vmem>>, vector<2x128xf32>
    %42 = arith.mulf %40, %41 : vector<2x128xf32>
    %c0_19 = arith.constant 0 : index
    %c0_20 = arith.constant 0 : index
    %43 = vector.load %arg7[%c0_19, %c0_20] : memref<128x8xf32, #tpu.memory_space<vmem>>, vector<128x8xf32>
    %cst_21 = arith.constant dense<0.000000e+00> : vector<2x8xf32>
    %44 = tpu.matmul %42, %43, %cst_21 {dimension_numbers = #tpu.dot_dimension_numbers<[1], [0], [0], [1], [0, 0, 1, 1], [], []>} : vector<2x128xf32>, vector<128x8xf32>, vector<2x8xf32> -> vector<2x8xf32>
    %cst_22 = arith.constant dense<0xFF800000> : vector<2xf32>
    %45 = vector.multi_reduction <maximumf>, %44, %cst_22 [1] : vector<2x8xf32> to vector<2xf32>
    %46 = vector.shape_cast %45 : vector<2xf32> to vector<2x1xf32>
    %47 = vector.broadcast %46 : vector<2x1xf32> to vector<2x8xf32>
    %48 = arith.subf %44, %47 : vector<2x8xf32>
    %49 = math.exp %48 : vector<2x8xf32>
    %c0_23 = arith.constant 0 : index
    %c256 = arith.constant 256 : index
    %50 = vector.load %arg3[%c0_23, %c256] : memref<2x264xf32, #tpu.memory_space<vmem>>, vector<2x8xf32>
    %51 = arith.mulf %49, %50 : vector<2x8xf32>
    %cst_24 = arith.constant dense<0.000000e+00> : vector<2xf32>
    %52 = vector.multi_reduction <add>, %51, %cst_24 [1] : vector<2x8xf32> to vector<2xf32>
    %53 = vector.shape_cast %52 : vector<2xf32> to vector<2x1xf32>
    %54 = tpu.reciprocal %53 {approx = true} : vector<2x1xf32> -> vector<2x1xf32>
    %55 = vector.broadcast %54 : vector<2x1xf32> to vector<2x8xf32>
    %56 = arith.mulf %51, %55 : vector<2x8xf32>
    %57 = vector.shape_cast %56 : vector<2x8xf32> to vector<2x1x8xf32>
    %c0_25 = arith.constant 0 : index
    %c0_26 = arith.constant 0 : index
    %c0_27 = arith.constant 0 : index
    %58 = vector.load %arg4[%c0_25, %c0_26, %c0_27] : memref<2x8x112xf32, #tpu.memory_space<vmem>>, vector<2x8x112xf32>
    "tpu.trace_start"() <{level = 10 : i32, message = "bqs,bsk->bqk"}> : () -> ()
    %cst_28 = arith.constant dense<0.000000e+00> : vector<2x1x112xf32>
    %59 = tpu.matmul %57, %58, %cst_28 {dimension_numbers = #tpu.dot_dimension_numbers<[2], [1], [1], [2], [0, 0, 0, 1, 1, 2], [0], [0]>} : vector<2x1x8xf32>, vector<2x8x112xf32>, vector<2x1x112xf32> -> vector<2x1x112xf32>
    "tpu.trace_stop"() : () -> ()
    %60 = vector.shape_cast %59 : vector<2x1x112xf32> to vector<2x112xf32>
    %61 = vector.extract_strided_slice %60 {offsets = [0, 0], sizes = [2, 96], strides = [1, 1]} : vector<2x112xf32> to vector<2x96xf32>
    %62 = vector.extract_strided_slice %60 {offsets = [0, 96], sizes = [2, 16], strides = [1, 1]} : vector<2x112xf32> to vector<2x16xf32>
    %63 = vector.extract_strided_slice %61 {offsets = [0, 0], sizes = [2, 64], strides = [1, 1]} : vector<2x96xf32> to vector<2x64xf32>
    %64 = vector.extract_strided_slice %36 {offsets = [0, 128], sizes = [2, 64], strides = [1, 1]} : vector<2x192xf32> to vector<2x64xf32>
    %65 = arith.addf %63, %64 : vector<2x64xf32>
    %c0_29 = arith.constant 0 : index
    %c0_30 = arith.constant 0 : index
    %66 = vector.load %arg8[%c0_29, %c0_30] : memref<1x64xf32, #tpu.memory_space<vmem>>, vector<1x64xf32>
    %67 = vector.broadcast %66 : vector<1x64xf32> to vector<2x64xf32>
    %68 = arith.addf %65, %67 : vector<2x64xf32>
    %69 = arith.negf %68 : vector<2x64xf32>
    %70 = math.exp %69 : vector<2x64xf32>
    %cst_31 = arith.constant 1.000000e+00 : f32
    %71 = vector.broadcast %cst_31 : f32 to vector<2x64xf32>
    %72 = arith.addf %71, %70 : vector<2x64xf32>
    %73 = arith.divf %71, %72 : vector<2x64xf32>
    %74 = vector.extract_strided_slice %73 {offsets = [0, 0], sizes = [2, 32], strides = [1, 1]} : vector<2x64xf32> to vector<2x32xf32>
    %75 = vector.extract_strided_slice %73 {offsets = [0, 32], sizes = [2, 32], strides = [1, 1]} : vector<2x64xf32> to vector<2x32xf32>
    %76 = vector.extract_strided_slice %61 {offsets = [0, 64], sizes = [2, 32], strides = [1, 1]} : vector<2x96xf32> to vector<2x32xf32>
    %77 = arith.mulf %34, %74 : vector<2x32xf32>
    %c96 = arith.constant 96 : index
    %c0_32 = arith.constant 0 : index
    %78 = vector.load %arg6[%c96, %c0_32] : memref<128x192xf32, #tpu.memory_space<vmem>>, vector<32x32xf32>
    %cst_33 = arith.constant dense<0.000000e+00> : vector<2x32xf32>
    %79 = tpu.matmul %77, %78, %cst_33 {dimension_numbers = #tpu.dot_dimension_numbers<[1], [0], [0], [1], [0, 0, 1, 1], [], []>} : vector<2x32xf32>, vector<32x32xf32>, vector<2x32xf32> -> vector<2x32xf32>
    %80 = arith.addf %76, %79 : vector<2x32xf32>
    %c0_34 = arith.constant 0 : index
    %c0_35 = arith.constant 0 : index
    %81 = vector.load %arg9[%c0_34, %c0_35] : memref<1x32xf32, #tpu.memory_space<vmem>>, vector<1x32xf32>
    %82 = vector.broadcast %81 : vector<1x32xf32> to vector<2x32xf32>
    %83 = arith.addf %80, %82 : vector<2x32xf32>
    %84 = math.tanh %83 : vector<2x32xf32>
    %85 = arith.mulf %75, %34 : vector<2x32xf32>
    %cst_36 = arith.constant 1.000000e+00 : f32
    %86 = vector.broadcast %cst_36 : f32 to vector<2x32xf32>
    %87 = arith.subf %86, %75 : vector<2x32xf32>
    %88 = arith.mulf %87, %84 : vector<2x32xf32>
    %89 = arith.addf %85, %88 : vector<2x32xf32>
    %90 = arith.mulf %9, %89 : vector<2x32xf32>
    %91 = arith.mulf %11, %34 : vector<2x32xf32>
    %92 = arith.addf %90, %91 : vector<2x32xf32>
    %93 = arith.index_cast %c0_i32 : i32 to index
    %c0_37 = arith.constant 0 : index
    %c0_38 = arith.constant 0 : index
    %94 = vector.load %arg10[%93, %c0_37, %c0_38] : memref<4x2x32xf32, #tpu.memory_space<vmem>>, vector<1x2x32xf32>
    %95 = vector.shape_cast %94 : vector<1x2x32xf32> to vector<2x32xf32>
    %96 = vector.shape_cast %92 : vector<2x32xf32> to vector<1x2x32xf32>
    tpu.vector_store %arg10[%93, %c0_37, %c0_38], %96 {strides = array<i32>} : memref<4x2x32xf32, #tpu.memory_space<vmem>>, vector<1x2x32xf32>,
    %97 = arith.index_cast %c0_i32 : i32 to index
    %c0_39 = arith.constant 0 : index
    %c0_40 = arith.constant 0 : index
    %98 = vector.load %arg11[%97, %c0_39, %c0_40] : memref<4x2x16xf32, #tpu.memory_space<vmem>>, vector<1x2x16xf32>
    %99 = vector.shape_cast %98 : vector<1x2x16xf32> to vector<2x16xf32>
    %100 = vector.shape_cast %62 : vector<2x16xf32> to vector<1x2x16xf32>
    tpu.vector_store %arg11[%97, %c0_39, %c0_40], %100 {strides = array<i32>} : memref<4x2x16xf32, #tpu.memory_space<vmem>>, vector<1x2x16xf32>,
    %101 = arith.index_cast %c0_i32 : i32 to index
    %c0_41 = arith.constant 0 : index
    %c0_42 = arith.constant 0 : index
    %102 = vector.load %arg12[%101, %c0_41, %c0_42] : memref<4x2x8xf32, #tpu.memory_space<vmem>>, vector<1x2x8xf32>
    %103 = vector.shape_cast %102 : vector<1x2x8xf32> to vector<2x8xf32>
    %104 = vector.shape_cast %56 : vector<2x8xf32> to vector<1x2x8xf32>
    tpu.vector_store %arg12[%101, %c0_41, %c0_42], %104 {strides = array<i32>} : memref<4x2x8xf32, #tpu.memory_space<vmem>>, vector<1x2x8xf32>,
    %c1_i32 = arith.constant 1 : i32
    %105 = arith.index_cast %c1_i32 : i32 to index
    %c0_43 = arith.constant 0 : index
    %c0_44 = arith.constant 0 : index
    %106 = vector.load %arg0[%105, %c0_43, %c0_44] : memref<4x2x64xf32, #tpu.memory_space<vmem>>, vector<1x2x64xf32>
    %107 = vector.shape_cast %106 : vector<1x2x64xf32> to vector<2x64xf32>
    %108 = arith.index_cast %c1_i32 : i32 to index
    %c0_45 = arith.constant 0 : index
    %c0_46 = arith.constant 0 : index
    %109 = vector.load %arg1[%108, %c0_45, %c0_46] : memref<4x2x32xf32, #tpu.memory_space<vmem>>, vector<1x2x32xf32>
    %110 = vector.shape_cast %109 : vector<1x2x32xf32> to vector<2x32xf32>
    %111 = arith.index_cast %c1_i32 : i32 to index
    %c0_47 = arith.constant 0 : index
    %c0_48 = arith.constant 0 : index
    %112 = vector.load %arg2[%111, %c0_47, %c0_48] : memref<4x2x32xf32, #tpu.memory_space<vmem>>, vector<1x2x32xf32>
    %113 = vector.shape_cast %112 : vector<1x2x32xf32> to vector<2x32xf32>
    %cst_49 = arith.constant 1.000000e+00 : f32
    %114 = vector.broadcast %cst_49 : f32 to vector<2x32xf32>
    %115 = arith.subf %114, %113 : vector<2x32xf32>
    %c0_50 = arith.constant 0 : index
    %c0_51 = arith.constant 0 : index
    %116 = vector.load %arg6[%c0_50, %c0_51] : memref<128x192xf32, #tpu.memory_space<vmem>>, vector<32x64xf32>
    %cst_52 = arith.constant dense<0.000000e+00> : vector<2x64xf32>
    %117 = tpu.matmul %92, %116, %cst_52 {dimension_numbers = #tpu.dot_dimension_numbers<[1], [0], [0], [1], [0, 0, 1, 1], [], []>} : vector<2x32xf32>, vector<32x64xf32>, vector<2x64xf32> -> vector<2x64xf32>
    %118 = arith.addf %117, %107 : vector<2x64xf32>
    %119 = arith.negf %118 : vector<2x64xf32>
    %120 = math.exp %119 : vector<2x64xf32>
    %cst_53 = arith.constant 1.000000e+00 : f32
    %121 = vector.broadcast %cst_53 : f32 to vector<2x64xf32>
    %122 = arith.addf %121, %120 : vector<2x64xf32>
    %123 = arith.divf %121, %122 : vector<2x64xf32>
    %124 = vector.extract_strided_slice %123 {offsets = [0, 0], sizes = [2, 32], strides = [1, 1]} : vector<2x64xf32> to vector<2x32xf32>
    %125 = vector.extract_strided_slice %123 {offsets = [0, 32], sizes = [2, 32], strides = [1, 1]} : vector<2x64xf32> to vector<2x32xf32>
    %126 = arith.mulf %92, %124 : vector<2x32xf32>
    %c32_54 = arith.constant 32 : index
    %c0_55 = arith.constant 0 : index
    %127 = vector.load %arg6[%c32_54, %c0_55] : memref<128x192xf32, #tpu.memory_space<vmem>>, vector<32x32xf32>
    %cst_56 = arith.constant dense<0.000000e+00> : vector<2x32xf32>
    %128 = tpu.matmul %126, %127, %cst_56 {dimension_numbers = #tpu.dot_dimension_numbers<[1], [0], [0], [1], [0, 0, 1, 1], [], []>} : vector<2x32xf32>, vector<32x32xf32>, vector<2x32xf32> -> vector<2x32xf32>
    %129 = arith.addf %128, %110 : vector<2x32xf32>
    %130 = math.tanh %129 : vector<2x32xf32>
    %131 = arith.mulf %125, %92 : vector<2x32xf32>
    %cst_57 = arith.constant 1.000000e+00 : f32
    %132 = vector.broadcast %cst_57 : f32 to vector<2x32xf32>
    %133 = arith.subf %132, %125 : vector<2x32xf32>
    %134 = arith.mulf %133, %130 : vector<2x32xf32>
    %135 = arith.addf %131, %134 : vector<2x32xf32>
    %136 = arith.mulf %113, %135 : vector<2x32xf32>
    %137 = arith.mulf %115, %92 : vector<2x32xf32>
    %138 = arith.addf %136, %137 : vector<2x32xf32>
    %c64_58 = arith.constant 64 : index
    %c0_59 = arith.constant 0 : index
    %139 = vector.load %arg6[%c64_58, %c0_59] : memref<128x192xf32, #tpu.memory_space<vmem>>, vector<32x192xf32>
    %cst_60 = arith.constant dense<0.000000e+00> : vector<2x192xf32>
    %140 = tpu.matmul %138, %139, %cst_60 {dimension_numbers = #tpu.dot_dimension_numbers<[1], [0], [0], [1], [0, 0, 1, 1], [], []>} : vector<2x32xf32>, vector<32x192xf32>, vector<2x192xf32> -> vector<2x192xf32>
    %c0_61 = arith.constant 0 : index
    %c0_62 = arith.constant 0 : index
    %141 = vector.load %arg3[%c0_61, %c0_62] : memref<2x264xf32, #tpu.memory_space<vmem>>, vector<2x128xf32>
    %142 = vector.extract_strided_slice %140 {offsets = [0, 0], sizes = [2, 128], strides = [1, 1]} : vector<2x192xf32> to vector<2x128xf32>
    %143 = arith.addf %141, %142 : vector<2x128xf32>
    %144 = math.tanh %143 : vector<2x128xf32>
    %c0_63 = arith.constant 0 : index
    %c128_64 = arith.constant 128 : index
    %145 = vector.load %arg3[%c0_63, %c128_64] : memref<2x264xf32, #tpu.memory_space<vmem>>, vector<2x128xf32>
    %146 = arith.mulf %144, %145 : vector<2x128xf32>
    %c0_65 = arith.constant 0 : index
    %c0_66 = arith.constant 0 : index
    %147 = vector.load %arg7[%c0_65, %c0_66] : memref<128x8xf32, #tpu.memory_space<vmem>>, vector<128x8xf32>
    %cst_67 = arith.constant dense<0.000000e+00> : vector<2x8xf32>
    %148 = tpu.matmul %146, %147, %cst_67 {dimension_numbers = #tpu.dot_dimension_numbers<[1], [0], [0], [1], [0, 0, 1, 1], [], []>} : vector<2x128xf32>, vector<128x8xf32>, vector<2x8xf32> -> vector<2x8xf32>
    %cst_68 = arith.constant dense<0xFF800000> : vector<2xf32>
    %149 = vector.multi_reduction <maximumf>, %148, %cst_68 [1] : vector<2x8xf32> to vector<2xf32>
    %150 = vector.shape_cast %149 : vector<2xf32> to vector<2x1xf32>
    %151 = vector.broadcast %150 : vector<2x1xf32> to vector<2x8xf32>
    %152 = arith.subf %148, %151 : vector<2x8xf32>
    %153 = math.exp %152 : vector<2x8xf32>
    %c0_69 = arith.constant 0 : index
    %c256_70 = arith.constant 256 : index
    %154 = vector.load %arg3[%c0_69, %c256_70] : memref<2x264xf32, #tpu.memory_space<vmem>>, vector<2x8xf32>
    %155 = arith.mulf %153, %154 : vector<2x8xf32>
    %cst_71 = arith.constant dense<0.000000e+00> : vector<2xf32>
    %156 = vector.multi_reduction <add>, %155, %cst_71 [1] : vector<2x8xf32> to vector<2xf32>
    %157 = vector.shape_cast %156 : vector<2xf32> to vector<2x1xf32>
    %158 = tpu.reciprocal %157 {approx = true} : vector<2x1xf32> -> vector<2x1xf32>
    %159 = vector.broadcast %158 : vector<2x1xf32> to vector<2x8xf32>
    %160 = arith.mulf %155, %159 : vector<2x8xf32>
    %161 = vector.shape_cast %160 : vector<2x8xf32> to vector<2x1x8xf32>
    %c0_72 = arith.constant 0 : index
    %c0_73 = arith.constant 0 : index
    %c0_74 = arith.constant 0 : index
    %162 = vector.load %arg4[%c0_72, %c0_73, %c0_74] : memref<2x8x112xf32, #tpu.memory_space<vmem>>, vector<2x8x112xf32>
    "tpu.trace_start"() <{level = 10 : i32, message = "bqs,bsk->bqk"}> : () -> ()
    %cst_75 = arith.constant dense<0.000000e+00> : vector<2x1x112xf32>
    %163 = tpu.matmul %161, %162, %cst_75 {dimension_numbers = #tpu.dot_dimension_numbers<[2], [1], [1], [2], [0, 0, 0, 1, 1, 2], [0], [0]>} : vector<2x1x8xf32>, vector<2x8x112xf32>, vector<2x1x112xf32> -> vector<2x1x112xf32>
    "tpu.trace_stop"() : () -> ()
    %164 = vector.shape_cast %163 : vector<2x1x112xf32> to vector<2x112xf32>
    %165 = vector.extract_strided_slice %164 {offsets = [0, 0], sizes = [2, 96], strides = [1, 1]} : vector<2x112xf32> to vector<2x96xf32>
    %166 = vector.extract_strided_slice %164 {offsets = [0, 96], sizes = [2, 16], strides = [1, 1]} : vector<2x112xf32> to vector<2x16xf32>
    %167 = vector.extract_strided_slice %165 {offsets = [0, 0], sizes = [2, 64], strides = [1, 1]} : vector<2x96xf32> to vector<2x64xf32>
    %168 = vector.extract_strided_slice %140 {offsets = [0, 128], sizes = [2, 64], strides = [1, 1]} : vector<2x192xf32> to vector<2x64xf32>
    %169 = arith.addf %167, %168 : vector<2x64xf32>
    %c0_76 = arith.constant 0 : index
    %c0_77 = arith.constant 0 : index
    %170 = vector.load %arg8[%c0_76, %c0_77] : memref<1x64xf32, #tpu.memory_space<vmem>>, vector<1x64xf32>
    %171 = vector.broadcast %170 : vector<1x64xf32> to vector<2x64xf32>
    %172 = arith.addf %169, %171 : vector<2x64xf32>
    %173 = arith.negf %172 : vector<2x64xf32>
    %174 = math.exp %173 : vector<2x64xf32>
    %cst_78 = arith.constant 1.000000e+00 : f32
    %175 = vector.broadcast %cst_78 : f32 to vector<2x64xf32>
    %176 = arith.addf %175, %174 : vector<2x64xf32>
    %177 = arith.divf %175, %176 : vector<2x64xf32>
    %178 = vector.extract_strided_slice %177 {offsets = [0, 0], sizes = [2, 32], strides = [1, 1]} : vector<2x64xf32> to vector<2x32xf32>
    %179 = vector.extract_strided_slice %177 {offsets = [0, 32], sizes = [2, 32], strides = [1, 1]} : vector<2x64xf32> to vector<2x32xf32>
    %180 = vector.extract_strided_slice %165 {offsets = [0, 64], sizes = [2, 32], strides = [1, 1]} : vector<2x96xf32> to vector<2x32xf32>
    %181 = arith.mulf %138, %178 : vector<2x32xf32>
    %c96_79 = arith.constant 96 : index
    %c0_80 = arith.constant 0 : index
    %182 = vector.load %arg6[%c96_79, %c0_80] : memref<128x192xf32, #tpu.memory_space<vmem>>, vector<32x32xf32>
    %cst_81 = arith.constant dense<0.000000e+00> : vector<2x32xf32>
    %183 = tpu.matmul %181, %182, %cst_81 {dimension_numbers = #tpu.dot_dimension_numbers<[1], [0], [0], [1], [0, 0, 1, 1], [], []>} : vector<2x32xf32>, vector<32x32xf32>, vector<2x32xf32> -> vector<2x32xf32>
    %184 = arith.addf %180, %183 : vector<2x32xf32>
    %c0_82 = arith.constant 0 : index
    %c0_83 = arith.constant 0 : index
    %185 = vector.load %arg9[%c0_82, %c0_83] : memref<1x32xf32, #tpu.memory_space<vmem>>, vector<1x32xf32>
    %186 = vector.broadcast %185 : vector<1x32xf32> to vector<2x32xf32>
    %187 = arith.addf %184, %186 : vector<2x32xf32>
    %188 = math.tanh %187 : vector<2x32xf32>
    %189 = arith.mulf %179, %138 : vector<2x32xf32>
    %cst_84 = arith.constant 1.000000e+00 : f32
    %190 = vector.broadcast %cst_84 : f32 to vector<2x32xf32>
    %191 = arith.subf %190, %179 : vector<2x32xf32>
    %192 = arith.mulf %191, %188 : vector<2x32xf32>
    %193 = arith.addf %189, %192 : vector<2x32xf32>
    %194 = arith.mulf %113, %193 : vector<2x32xf32>
    %195 = arith.mulf %115, %138 : vector<2x32xf32>
    %196 = arith.addf %194, %195 : vector<2x32xf32>
    %197 = arith.index_cast %c1_i32 : i32 to index
    %c0_85 = arith.constant 0 : index
    %c0_86 = arith.constant 0 : index
    %198 = vector.load %arg10[%197, %c0_85, %c0_86] : memref<4x2x32xf32, #tpu.memory_space<vmem>>, vector<1x2x32xf32>
    %199 = vector.shape_cast %198 : vector<1x2x32xf32> to vector<2x32xf32>
    %200 = vector.shape_cast %196 : vector<2x32xf32> to vector<1x2x32xf32>
    tpu.vector_store %arg10[%197, %c0_85, %c0_86], %200 {strides = array<i32>} : memref<4x2x32xf32, #tpu.memory_space<vmem>>, vector<1x2x32xf32>,
    %201 = arith.index_cast %c1_i32 : i32 to index
    %c0_87 = arith.constant 0 : index
    %c0_88 = arith.constant 0 : index
    %202 = vector.load %arg11[%201, %c0_87, %c0_88] : memref<4x2x16xf32, #tpu.memory_space<vmem>>, vector<1x2x16xf32>
    %203 = vector.shape_cast %202 : vector<1x2x16xf32> to vector<2x16xf32>
    %204 = vector.shape_cast %166 : vector<2x16xf32> to vector<1x2x16xf32>
    tpu.vector_store %arg11[%201, %c0_87, %c0_88], %204 {strides = array<i32>} : memref<4x2x16xf32, #tpu.memory_space<vmem>>, vector<1x2x16xf32>,
    %205 = arith.index_cast %c1_i32 : i32 to index
    %c0_89 = arith.constant 0 : index
    %c0_90 = arith.constant 0 : index
    %206 = vector.load %arg12[%205, %c0_89, %c0_90] : memref<4x2x8xf32, #tpu.memory_space<vmem>>, vector<1x2x8xf32>
    %207 = vector.shape_cast %206 : vector<1x2x8xf32> to vector<2x8xf32>
    %208 = vector.shape_cast %160 : vector<2x8xf32> to vector<1x2x8xf32>
    tpu.vector_store %arg12[%205, %c0_89, %c0_90], %208 {strides = array<i32>} : memref<4x2x8xf32, #tpu.memory_space<vmem>>, vector<1x2x8xf32>,
    %c2_i32 = arith.constant 2 : i32
    %209 = arith.index_cast %c2_i32 : i32 to index
    %c0_91 = arith.constant 0 : index
    %c0_92 = arith.constant 0 : index
    %210 = vector.load %arg0[%209, %c0_91, %c0_92] : memref<4x2x64xf32, #tpu.memory_space<vmem>>, vector<1x2x64xf32>
    %211 = vector.shape_cast %210 : vector<1x2x64xf32> to vector<2x64xf32>
    %212 = arith.index_cast %c2_i32 : i32 to index
    %c0_93 = arith.constant 0 : index
    %c0_94 = arith.constant 0 : index
    %213 = vector.load %arg1[%212, %c0_93, %c0_94] : memref<4x2x32xf32, #tpu.memory_space<vmem>>, vector<1x2x32xf32>
    %214 = vector.shape_cast %213 : vector<1x2x32xf32> to vector<2x32xf32>
    %215 = arith.index_cast %c2_i32 : i32 to index
    %c0_95 = arith.constant 0 : index
    %c0_96 = arith.constant 0 : index
    %216 = vector.load %arg2[%215, %c0_95, %c0_96] : memref<4x2x32xf32, #tpu.memory_space<vmem>>, vector<1x2x32xf32>
    %217 = vector.shape_cast %216 : vector<1x2x32xf32> to vector<2x32xf32>
    %cst_97 = arith.constant 1.000000e+00 : f32
    %218 = vector.broadcast %cst_97 : f32 to vector<2x32xf32>
    %219 = arith.subf %218, %217 : vector<2x32xf32>
    %c0_98 = arith.constant 0 : index
    %c0_99 = arith.constant 0 : index
    %220 = vector.load %arg6[%c0_98, %c0_99] : memref<128x192xf32, #tpu.memory_space<vmem>>, vector<32x64xf32>
    %cst_100 = arith.constant dense<0.000000e+00> : vector<2x64xf32>
    %221 = tpu.matmul %196, %220, %cst_100 {dimension_numbers = #tpu.dot_dimension_numbers<[1], [0], [0], [1], [0, 0, 1, 1], [], []>} : vector<2x32xf32>, vector<32x64xf32>, vector<2x64xf32> -> vector<2x64xf32>
    %222 = arith.addf %221, %211 : vector<2x64xf32>
    %223 = arith.negf %222 : vector<2x64xf32>
    %224 = math.exp %223 : vector<2x64xf32>
    %cst_101 = arith.constant 1.000000e+00 : f32
    %225 = vector.broadcast %cst_101 : f32 to vector<2x64xf32>
    %226 = arith.addf %225, %224 : vector<2x64xf32>
    %227 = arith.divf %225, %226 : vector<2x64xf32>
    %228 = vector.extract_strided_slice %227 {offsets = [0, 0], sizes = [2, 32], strides = [1, 1]} : vector<2x64xf32> to vector<2x32xf32>
    %229 = vector.extract_strided_slice %227 {offsets = [0, 32], sizes = [2, 32], strides = [1, 1]} : vector<2x64xf32> to vector<2x32xf32>
    %230 = arith.mulf %196, %228 : vector<2x32xf32>
    %c32_102 = arith.constant 32 : index
    %c0_103 = arith.constant 0 : index
    %231 = vector.load %arg6[%c32_102, %c0_103] : memref<128x192xf32, #tpu.memory_space<vmem>>, vector<32x32xf32>
    %cst_104 = arith.constant dense<0.000000e+00> : vector<2x32xf32>
    %232 = tpu.matmul %230, %231, %cst_104 {dimension_numbers = #tpu.dot_dimension_numbers<[1], [0], [0], [1], [0, 0, 1, 1], [], []>} : vector<2x32xf32>, vector<32x32xf32>, vector<2x32xf32> -> vector<2x32xf32>
    %233 = arith.addf %232, %214 : vector<2x32xf32>
    %234 = math.tanh %233 : vector<2x32xf32>
    %235 = arith.mulf %229, %196 : vector<2x32xf32>
    %cst_105 = arith.constant 1.000000e+00 : f32
    %236 = vector.broadcast %cst_105 : f32 to vector<2x32xf32>
    %237 = arith.subf %236, %229 : vector<2x32xf32>
    %238 = arith.mulf %237, %234 : vector<2x32xf32>
    %239 = arith.addf %235, %238 : vector<2x32xf32>
    %240 = arith.mulf %217, %239 : vector<2x32xf32>
    %241 = arith.mulf %219, %196 : vector<2x32xf32>
    %242 = arith.addf %240, %241 : vector<2x32xf32>
    %c64_106 = arith.constant 64 : index
    %c0_107 = arith.constant 0 : index
    %243 = vector.load %arg6[%c64_106, %c0_107] : memref<128x192xf32, #tpu.memory_space<vmem>>, vector<32x192xf32>
    %cst_108 = arith.constant dense<0.000000e+00> : vector<2x192xf32>
    %244 = tpu.matmul %242, %243, %cst_108 {dimension_numbers = #tpu.dot_dimension_numbers<[1], [0], [0], [1], [0, 0, 1, 1], [], []>} : vector<2x32xf32>, vector<32x192xf32>, vector<2x192xf32> -> vector<2x192xf32>
    %c0_109 = arith.constant 0 : index
    %c0_110 = arith.constant 0 : index
    %245 = vector.load %arg3[%c0_109, %c0_110] : memref<2x264xf32, #tpu.memory_space<vmem>>, vector<2x128xf32>
    %246 = vector.extract_strided_slice %244 {offsets = [0, 0], sizes = [2, 128], strides = [1, 1]} : vector<2x192xf32> to vector<2x128xf32>
    %247 = arith.addf %245, %246 : vector<2x128xf32>
    %248 = math.tanh %247 : vector<2x128xf32>
    %c0_111 = arith.constant 0 : index
    %c128_112 = arith.constant 128 : index
    %249 = vector.load %arg3[%c0_111, %c128_112] : memref<2x264xf32, #tpu.memory_space<vmem>>, vector<2x128xf32>
    %250 = arith.mulf %248, %249 : vector<2x128xf32>
    %c0_113 = arith.constant 0 : index
    %c0_114 = arith.constant 0 : index
    %251 = vector.load %arg7[%c0_113, %c0_114] : memref<128x8xf32, #tpu.memory_space<vmem>>, vector<128x8xf32>
    %cst_115 = arith.constant dense<0.000000e+00> : vector<2x8xf32>
    %252 = tpu.matmul %250, %251, %cst_115 {dimension_numbers = #tpu.dot_dimension_numbers<[1], [0], [0], [1], [0, 0, 1, 1], [], []>} : vector<2x128xf32>, vector<128x8xf32>, vector<2x8xf32> -> vector<2x8xf32>
    %cst_116 = arith.constant dense<0xFF800000> : vector<2xf32>
    %253 = vector.multi_reduction <maximumf>, %252, %cst_116 [1] : vector<2x8xf32> to vector<2xf32>
    %254 = vector.shape_cast %253 : vector<2xf32> to vector<2x1xf32>
    %255 = vector.broadcast %254 : vector<2x1xf32> to vector<2x8xf32>
    %256 = arith.subf %252, %255 : vector<2x8xf32>
    %257 = math.exp %256 : vector<2x8xf32>
    %c0_117 = arith.constant 0 : index
    %c256_118 = arith.constant 256 : index
    %258 = vector.load %arg3[%c0_117, %c256_118] : memref<2x264xf32, #tpu.memory_space<vmem>>, vector<2x8xf32>
    %259 = arith.mulf %257, %258 : vector<2x8xf32>
    %cst_119 = arith.constant dense<0.000000e+00> : vector<2xf32>
    %260 = vector.multi_reduction <add>, %259, %cst_119 [1] : vector<2x8xf32> to vector<2xf32>
    %261 = vector.shape_cast %260 : vector<2xf32> to vector<2x1xf32>
    %262 = tpu.reciprocal %261 {approx = true} : vector<2x1xf32> -> vector<2x1xf32>
    %263 = vector.broadcast %262 : vector<2x1xf32> to vector<2x8xf32>
    %264 = arith.mulf %259, %263 : vector<2x8xf32>
    %265 = vector.shape_cast %264 : vector<2x8xf32> to vector<2x1x8xf32>
    %c0_120 = arith.constant 0 : index
    %c0_121 = arith.constant 0 : index
    %c0_122 = arith.constant 0 : index
    %266 = vector.load %arg4[%c0_120, %c0_121, %c0_122] : memref<2x8x112xf32, #tpu.memory_space<vmem>>, vector<2x8x112xf32>
    "tpu.trace_start"() <{level = 10 : i32, message = "bqs,bsk->bqk"}> : () -> ()
    %cst_123 = arith.constant dense<0.000000e+00> : vector<2x1x112xf32>
    %267 = tpu.matmul %265, %266, %cst_123 {dimension_numbers = #tpu.dot_dimension_numbers<[2], [1], [1], [2], [0, 0, 0, 1, 1, 2], [0], [0]>} : vector<2x1x8xf32>, vector<2x8x112xf32>, vector<2x1x112xf32> -> vector<2x1x112xf32>
    "tpu.trace_stop"() : () -> ()
    %268 = vector.shape_cast %267 : vector<2x1x112xf32> to vector<2x112xf32>
    %269 = vector.extract_strided_slice %268 {offsets = [0, 0], sizes = [2, 96], strides = [1, 1]} : vector<2x112xf32> to vector<2x96xf32>
    %270 = vector.extract_strided_slice %268 {offsets = [0, 96], sizes = [2, 16], strides = [1, 1]} : vector<2x112xf32> to vector<2x16xf32>
    %271 = vector.extract_strided_slice %269 {offsets = [0, 0], sizes = [2, 64], strides = [1, 1]} : vector<2x96xf32> to vector<2x64xf32>
    %272 = vector.extract_strided_slice %244 {offsets = [0, 128], sizes = [2, 64], strides = [1, 1]} : vector<2x192xf32> to vector<2x64xf32>
    %273 = arith.addf %271, %272 : vector<2x64xf32>
    %c0_124 = arith.constant 0 : index
    %c0_125 = arith.constant 0 : index
    %274 = vector.load %arg8[%c0_124, %c0_125] : memref<1x64xf32, #tpu.memory_space<vmem>>, vector<1x64xf32>
    %275 = vector.broadcast %274 : vector<1x64xf32> to vector<2x64xf32>
    %276 = arith.addf %273, %275 : vector<2x64xf32>
    %277 = arith.negf %276 : vector<2x64xf32>
    %278 = math.exp %277 : vector<2x64xf32>
    %cst_126 = arith.constant 1.000000e+00 : f32
    %279 = vector.broadcast %cst_126 : f32 to vector<2x64xf32>
    %280 = arith.addf %279, %278 : vector<2x64xf32>
    %281 = arith.divf %279, %280 : vector<2x64xf32>
    %282 = vector.extract_strided_slice %281 {offsets = [0, 0], sizes = [2, 32], strides = [1, 1]} : vector<2x64xf32> to vector<2x32xf32>
    %283 = vector.extract_strided_slice %281 {offsets = [0, 32], sizes = [2, 32], strides = [1, 1]} : vector<2x64xf32> to vector<2x32xf32>
    %284 = vector.extract_strided_slice %269 {offsets = [0, 64], sizes = [2, 32], strides = [1, 1]} : vector<2x96xf32> to vector<2x32xf32>
    %285 = arith.mulf %242, %282 : vector<2x32xf32>
    %c96_127 = arith.constant 96 : index
    %c0_128 = arith.constant 0 : index
    %286 = vector.load %arg6[%c96_127, %c0_128] : memref<128x192xf32, #tpu.memory_space<vmem>>, vector<32x32xf32>
    %cst_129 = arith.constant dense<0.000000e+00> : vector<2x32xf32>
    %287 = tpu.matmul %285, %286, %cst_129 {dimension_numbers = #tpu.dot_dimension_numbers<[1], [0], [0], [1], [0, 0, 1, 1], [], []>} : vector<2x32xf32>, vector<32x32xf32>, vector<2x32xf32> -> vector<2x32xf32>
    %288 = arith.addf %284, %287 : vector<2x32xf32>
    %c0_130 = arith.constant 0 : index
    %c0_131 = arith.constant 0 : index
    %289 = vector.load %arg9[%c0_130, %c0_131] : memref<1x32xf32, #tpu.memory_space<vmem>>, vector<1x32xf32>
    %290 = vector.broadcast %289 : vector<1x32xf32> to vector<2x32xf32>
    %291 = arith.addf %288, %290 : vector<2x32xf32>
    %292 = math.tanh %291 : vector<2x32xf32>
    %293 = arith.mulf %283, %242 : vector<2x32xf32>
    %cst_132 = arith.constant 1.000000e+00 : f32
    %294 = vector.broadcast %cst_132 : f32 to vector<2x32xf32>
    %295 = arith.subf %294, %283 : vector<2x32xf32>
    %296 = arith.mulf %295, %292 : vector<2x32xf32>
    %297 = arith.addf %293, %296 : vector<2x32xf32>
    %298 = arith.mulf %217, %297 : vector<2x32xf32>
    %299 = arith.mulf %219, %242 : vector<2x32xf32>
    %300 = arith.addf %298, %299 : vector<2x32xf32>
    %301 = arith.index_cast %c2_i32 : i32 to index
    %c0_133 = arith.constant 0 : index
    %c0_134 = arith.constant 0 : index
    %302 = vector.load %arg10[%301, %c0_133, %c0_134] : memref<4x2x32xf32, #tpu.memory_space<vmem>>, vector<1x2x32xf32>
    %303 = vector.shape_cast %302 : vector<1x2x32xf32> to vector<2x32xf32>
    %304 = vector.shape_cast %300 : vector<2x32xf32> to vector<1x2x32xf32>
    tpu.vector_store %arg10[%301, %c0_133, %c0_134], %304 {strides = array<i32>} : memref<4x2x32xf32, #tpu.memory_space<vmem>>, vector<1x2x32xf32>,
    %305 = arith.index_cast %c2_i32 : i32 to index
    %c0_135 = arith.constant 0 : index
    %c0_136 = arith.constant 0 : index
    %306 = vector.load %arg11[%305, %c0_135, %c0_136] : memref<4x2x16xf32, #tpu.memory_space<vmem>>, vector<1x2x16xf32>
    %307 = vector.shape_cast %306 : vector<1x2x16xf32> to vector<2x16xf32>
    %308 = vector.shape_cast %270 : vector<2x16xf32> to vector<1x2x16xf32>
    tpu.vector_store %arg11[%305, %c0_135, %c0_136], %308 {strides = array<i32>} : memref<4x2x16xf32, #tpu.memory_space<vmem>>, vector<1x2x16xf32>,
    %309 = arith.index_cast %c2_i32 : i32 to index
    %c0_137 = arith.constant 0 : index
    %c0_138 = arith.constant 0 : index
    %310 = vector.load %arg12[%309, %c0_137, %c0_138] : memref<4x2x8xf32, #tpu.memory_space<vmem>>, vector<1x2x8xf32>
    %311 = vector.shape_cast %310 : vector<1x2x8xf32> to vector<2x8xf32>
    %312 = vector.shape_cast %264 : vector<2x8xf32> to vector<1x2x8xf32>
    tpu.vector_store %arg12[%309, %c0_137, %c0_138], %312 {strides = array<i32>} : memref<4x2x8xf32, #tpu.memory_space<vmem>>, vector<1x2x8xf32>,
    %c3_i32 = arith.constant 3 : i32
    %313 = arith.index_cast %c3_i32 : i32 to index
    %c0_139 = arith.constant 0 : index
    %c0_140 = arith.constant 0 : index
    %314 = vector.load %arg0[%313, %c0_139, %c0_140] : memref<4x2x64xf32, #tpu.memory_space<vmem>>, vector<1x2x64xf32>
    %315 = vector.shape_cast %314 : vector<1x2x64xf32> to vector<2x64xf32>
    %316 = arith.index_cast %c3_i32 : i32 to index
    %c0_141 = arith.constant 0 : index
    %c0_142 = arith.constant 0 : index
    %317 = vector.load %arg1[%316, %c0_141, %c0_142] : memref<4x2x32xf32, #tpu.memory_space<vmem>>, vector<1x2x32xf32>
    %318 = vector.shape_cast %317 : vector<1x2x32xf32> to vector<2x32xf32>
    %319 = arith.index_cast %c3_i32 : i32 to index
    %c0_143 = arith.constant 0 : index
    %c0_144 = arith.constant 0 : index
    %320 = vector.load %arg2[%319, %c0_143, %c0_144] : memref<4x2x32xf32, #tpu.memory_space<vmem>>, vector<1x2x32xf32>
    %321 = vector.shape_cast %320 : vector<1x2x32xf32> to vector<2x32xf32>
    %cst_145 = arith.constant 1.000000e+00 : f32
    %322 = vector.broadcast %cst_145 : f32 to vector<2x32xf32>
    %323 = arith.subf %322, %321 : vector<2x32xf32>
    %c0_146 = arith.constant 0 : index
    %c0_147 = arith.constant 0 : index
    %324 = vector.load %arg6[%c0_146, %c0_147] : memref<128x192xf32, #tpu.memory_space<vmem>>, vector<32x64xf32>
    %cst_148 = arith.constant dense<0.000000e+00> : vector<2x64xf32>
    %325 = tpu.matmul %300, %324, %cst_148 {dimension_numbers = #tpu.dot_dimension_numbers<[1], [0], [0], [1], [0, 0, 1, 1], [], []>} : vector<2x32xf32>, vector<32x64xf32>, vector<2x64xf32> -> vector<2x64xf32>
    %326 = arith.addf %325, %315 : vector<2x64xf32>
    %327 = arith.negf %326 : vector<2x64xf32>
    %328 = math.exp %327 : vector<2x64xf32>
    %cst_149 = arith.constant 1.000000e+00 : f32
    %329 = vector.broadcast %cst_149 : f32 to vector<2x64xf32>
    %330 = arith.addf %329, %328 : vector<2x64xf32>
    %331 = arith.divf %329, %330 : vector<2x64xf32>
    %332 = vector.extract_strided_slice %331 {offsets = [0, 0], sizes = [2, 32], strides = [1, 1]} : vector<2x64xf32> to vector<2x32xf32>
    %333 = vector.extract_strided_slice %331 {offsets = [0, 32], sizes = [2, 32], strides = [1, 1]} : vector<2x64xf32> to vector<2x32xf32>
    %334 = arith.mulf %300, %332 : vector<2x32xf32>
    %c32_150 = arith.constant 32 : index
    %c0_151 = arith.constant 0 : index
    %335 = vector.load %arg6[%c32_150, %c0_151] : memref<128x192xf32, #tpu.memory_space<vmem>>, vector<32x32xf32>
    %cst_152 = arith.constant dense<0.000000e+00> : vector<2x32xf32>
    %336 = tpu.matmul %334, %335, %cst_152 {dimension_numbers = #tpu.dot_dimension_numbers<[1], [0], [0], [1], [0, 0, 1, 1], [], []>} : vector<2x32xf32>, vector<32x32xf32>, vector<2x32xf32> -> vector<2x32xf32>
    %337 = arith.addf %336, %318 : vector<2x32xf32>
    %338 = math.tanh %337 : vector<2x32xf32>
    %339 = arith.mulf %333, %300 : vector<2x32xf32>
    %cst_153 = arith.constant 1.000000e+00 : f32
    %340 = vector.broadcast %cst_153 : f32 to vector<2x32xf32>
    %341 = arith.subf %340, %333 : vector<2x32xf32>
    %342 = arith.mulf %341, %338 : vector<2x32xf32>
    %343 = arith.addf %339, %342 : vector<2x32xf32>
    %344 = arith.mulf %321, %343 : vector<2x32xf32>
    %345 = arith.mulf %323, %300 : vector<2x32xf32>
    %346 = arith.addf %344, %345 : vector<2x32xf32>
    %c64_154 = arith.constant 64 : index
    %c0_155 = arith.constant 0 : index
    %347 = vector.load %arg6[%c64_154, %c0_155] : memref<128x192xf32, #tpu.memory_space<vmem>>, vector<32x192xf32>
    %cst_156 = arith.constant dense<0.000000e+00> : vector<2x192xf32>
    %348 = tpu.matmul %346, %347, %cst_156 {dimension_numbers = #tpu.dot_dimension_numbers<[1], [0], [0], [1], [0, 0, 1, 1], [], []>} : vector<2x32xf32>, vector<32x192xf32>, vector<2x192xf32> -> vector<2x192xf32>
    %c0_157 = arith.constant 0 : index
    %c0_158 = arith.constant 0 : index
    %349 = vector.load %arg3[%c0_157, %c0_158] : memref<2x264xf32, #tpu.memory_space<vmem>>, vector<2x128xf32>
    %350 = vector.extract_strided_slice %348 {offsets = [0, 0], sizes = [2, 128], strides = [1, 1]} : vector<2x192xf32> to vector<2x128xf32>
    %351 = arith.addf %349, %350 : vector<2x128xf32>
    %352 = math.tanh %351 : vector<2x128xf32>
    %c0_159 = arith.constant 0 : index
    %c128_160 = arith.constant 128 : index
    %353 = vector.load %arg3[%c0_159, %c128_160] : memref<2x264xf32, #tpu.memory_space<vmem>>, vector<2x128xf32>
    %354 = arith.mulf %352, %353 : vector<2x128xf32>
    %c0_161 = arith.constant 0 : index
    %c0_162 = arith.constant 0 : index
    %355 = vector.load %arg7[%c0_161, %c0_162] : memref<128x8xf32, #tpu.memory_space<vmem>>, vector<128x8xf32>
    %cst_163 = arith.constant dense<0.000000e+00> : vector<2x8xf32>
    %356 = tpu.matmul %354, %355, %cst_163 {dimension_numbers = #tpu.dot_dimension_numbers<[1], [0], [0], [1], [0, 0, 1, 1], [], []>} : vector<2x128xf32>, vector<128x8xf32>, vector<2x8xf32> -> vector<2x8xf32>
    %cst_164 = arith.constant dense<0xFF800000> : vector<2xf32>
    %357 = vector.multi_reduction <maximumf>, %356, %cst_164 [1] : vector<2x8xf32> to vector<2xf32>
    %358 = vector.shape_cast %357 : vector<2xf32> to vector<2x1xf32>
    %359 = vector.broadcast %358 : vector<2x1xf32> to vector<2x8xf32>
    %360 = arith.subf %356, %359 : vector<2x8xf32>
    %361 = math.exp %360 : vector<2x8xf32>
    %c0_165 = arith.constant 0 : index
    %c256_166 = arith.constant 256 : index
    %362 = vector.load %arg3[%c0_165, %c256_166] : memref<2x264xf32, #tpu.memory_space<vmem>>, vector<2x8xf32>
    %363 = arith.mulf %361, %362 : vector<2x8xf32>
    %cst_167 = arith.constant dense<0.000000e+00> : vector<2xf32>
    %364 = vector.multi_reduction <add>, %363, %cst_167 [1] : vector<2x8xf32> to vector<2xf32>
    %365 = vector.shape_cast %364 : vector<2xf32> to vector<2x1xf32>
    %366 = tpu.reciprocal %365 {approx = true} : vector<2x1xf32> -> vector<2x1xf32>
    %367 = vector.broadcast %366 : vector<2x1xf32> to vector<2x8xf32>
    %368 = arith.mulf %363, %367 : vector<2x8xf32>
    %369 = vector.shape_cast %368 : vector<2x8xf32> to vector<2x1x8xf32>
    %c0_168 = arith.constant 0 : index
    %c0_169 = arith.constant 0 : index
    %c0_170 = arith.constant 0 : index
    %370 = vector.load %arg4[%c0_168, %c0_169, %c0_170] : memref<2x8x112xf32, #tpu.memory_space<vmem>>, vector<2x8x112xf32>
    "tpu.trace_start"() <{level = 10 : i32, message = "bqs,bsk->bqk"}> : () -> ()
    %cst_171 = arith.constant dense<0.000000e+00> : vector<2x1x112xf32>
    %371 = tpu.matmul %369, %370, %cst_171 {dimension_numbers = #tpu.dot_dimension_numbers<[2], [1], [1], [2], [0, 0, 0, 1, 1, 2], [0], [0]>} : vector<2x1x8xf32>, vector<2x8x112xf32>, vector<2x1x112xf32> -> vector<2x1x112xf32>
    "tpu.trace_stop"() : () -> ()
    %372 = vector.shape_cast %371 : vector<2x1x112xf32> to vector<2x112xf32>
    %373 = vector.extract_strided_slice %372 {offsets = [0, 0], sizes = [2, 96], strides = [1, 1]} : vector<2x112xf32> to vector<2x96xf32>
    %374 = vector.extract_strided_slice %372 {offsets = [0, 96], sizes = [2, 16], strides = [1, 1]} : vector<2x112xf32> to vector<2x16xf32>
    %375 = vector.extract_strided_slice %373 {offsets = [0, 0], sizes = [2, 64], strides = [1, 1]} : vector<2x96xf32> to vector<2x64xf32>
    %376 = vector.extract_strided_slice %348 {offsets = [0, 128], sizes = [2, 64], strides = [1, 1]} : vector<2x192xf32> to vector<2x64xf32>
    %377 = arith.addf %375, %376 : vector<2x64xf32>
    %c0_172 = arith.constant 0 : index
    %c0_173 = arith.constant 0 : index
    %378 = vector.load %arg8[%c0_172, %c0_173] : memref<1x64xf32, #tpu.memory_space<vmem>>, vector<1x64xf32>
    %379 = vector.broadcast %378 : vector<1x64xf32> to vector<2x64xf32>
    %380 = arith.addf %377, %379 : vector<2x64xf32>
    %381 = arith.negf %380 : vector<2x64xf32>
    %382 = math.exp %381 : vector<2x64xf32>
    %cst_174 = arith.constant 1.000000e+00 : f32
    %383 = vector.broadcast %cst_174 : f32 to vector<2x64xf32>
    %384 = arith.addf %383, %382 : vector<2x64xf32>
    %385 = arith.divf %383, %384 : vector<2x64xf32>
    %386 = vector.extract_strided_slice %385 {offsets = [0, 0], sizes = [2, 32], strides = [1, 1]} : vector<2x64xf32> to vector<2x32xf32>
    %387 = vector.extract_strided_slice %385 {offsets = [0, 32], sizes = [2, 32], strides = [1, 1]} : vector<2x64xf32> to vector<2x32xf32>
    %388 = vector.extract_strided_slice %373 {offsets = [0, 64], sizes = [2, 32], strides = [1, 1]} : vector<2x96xf32> to vector<2x32xf32>
    %389 = arith.mulf %346, %386 : vector<2x32xf32>
    %c96_175 = arith.constant 96 : index
    %c0_176 = arith.constant 0 : index
    %390 = vector.load %arg6[%c96_175, %c0_176] : memref<128x192xf32, #tpu.memory_space<vmem>>, vector<32x32xf32>
    %cst_177 = arith.constant dense<0.000000e+00> : vector<2x32xf32>
    %391 = tpu.matmul %389, %390, %cst_177 {dimension_numbers = #tpu.dot_dimension_numbers<[1], [0], [0], [1], [0, 0, 1, 1], [], []>} : vector<2x32xf32>, vector<32x32xf32>, vector<2x32xf32> -> vector<2x32xf32>
    %392 = arith.addf %388, %391 : vector<2x32xf32>
    %c0_178 = arith.constant 0 : index
    %c0_179 = arith.constant 0 : index
    %393 = vector.load %arg9[%c0_178, %c0_179] : memref<1x32xf32, #tpu.memory_space<vmem>>, vector<1x32xf32>
    %394 = vector.broadcast %393 : vector<1x32xf32> to vector<2x32xf32>
    %395 = arith.addf %392, %394 : vector<2x32xf32>
    %396 = math.tanh %395 : vector<2x32xf32>
    %397 = arith.mulf %387, %346 : vector<2x32xf32>
    %cst_180 = arith.constant 1.000000e+00 : f32
    %398 = vector.broadcast %cst_180 : f32 to vector<2x32xf32>
    %399 = arith.subf %398, %387 : vector<2x32xf32>
    %400 = arith.mulf %399, %396 : vector<2x32xf32>
    %401 = arith.addf %397, %400 : vector<2x32xf32>
    %402 = arith.mulf %321, %401 : vector<2x32xf32>
    %403 = arith.mulf %323, %346 : vector<2x32xf32>
    %404 = arith.addf %402, %403 : vector<2x32xf32>
    %405 = arith.index_cast %c3_i32 : i32 to index
    %c0_181 = arith.constant 0 : index
    %c0_182 = arith.constant 0 : index
    %406 = vector.load %arg10[%405, %c0_181, %c0_182] : memref<4x2x32xf32, #tpu.memory_space<vmem>>, vector<1x2x32xf32>
    %407 = vector.shape_cast %406 : vector<1x2x32xf32> to vector<2x32xf32>
    %408 = vector.shape_cast %404 : vector<2x32xf32> to vector<1x2x32xf32>
    tpu.vector_store %arg10[%405, %c0_181, %c0_182], %408 {strides = array<i32>} : memref<4x2x32xf32, #tpu.memory_space<vmem>>, vector<1x2x32xf32>,
    %409 = arith.index_cast %c3_i32 : i32 to index
    %c0_183 = arith.constant 0 : index
    %c0_184 = arith.constant 0 : index
    %410 = vector.load %arg11[%409, %c0_183, %c0_184] : memref<4x2x16xf32, #tpu.memory_space<vmem>>, vector<1x2x16xf32>
    %411 = vector.shape_cast %410 : vector<1x2x16xf32> to vector<2x16xf32>
    %412 = vector.shape_cast %374 : vector<2x16xf32> to vector<1x2x16xf32>
    tpu.vector_store %arg11[%409, %c0_183, %c0_184], %412 {strides = array<i32>} : memref<4x2x16xf32, #tpu.memory_space<vmem>>, vector<1x2x16xf32>,
    %413 = arith.index_cast %c3_i32 : i32 to index
    %c0_185 = arith.constant 0 : index
    %c0_186 = arith.constant 0 : index
    %414 = vector.load %arg12[%413, %c0_185, %c0_186] : memref<4x2x8xf32, #tpu.memory_space<vmem>>, vector<1x2x8xf32>
    %415 = vector.shape_cast %414 : vector<1x2x8xf32> to vector<2x8xf32>
    %416 = vector.shape_cast %368 : vector<2x8xf32> to vector<1x2x8xf32>
    tpu.vector_store %arg12[%413, %c0_185, %c0_186], %416 {strides = array<i32>} : memref<4x2x8xf32, #tpu.memory_space<vmem>>, vector<1x2x8xf32>,
    %c4_i32 = arith.constant 4 : i32
    return
  }
}

</mosaic_0001>

<bundles_post_ra>
// kernel: gru_attention_decoder.1
= control target key start
LH: loop header
LB: loop body
LE: loop exit
PB: predicated region body
PF: predicated region fallthrough
CT: control target
= control target key end

     0   :  { %18 = vsyncpa [#allocation3], 0  ;;  %v4672_v1 = vmov 0.0   ;;  %vm3623_vm0 = vmmov 0   ;;  %s3624_s27 = smov 32   ;;  %s4659_s0 = inlined_call_operand.vmem [shape: f32[4,2,64], index: 0, kind: input, shape index: {}]   ;;  %s4660_s1 = inlined_call_operand.vmem [shape: f32[4,2,32], index: 1, kind: input, shape index: {}]   ;;  %s4661_s2 = inlined_call_operand.vmem [shape: f32[4,2,32], index: 2, kind: input, shape index: {}]   ;;  %s4662_s3 = inlined_call_operand.vmem [shape: f32[2,264], index: 3, kind: input, shape index: {}]   ;;  %s4663_s4 = inlined_call_operand.vmem [shape: f32[2,8,112], index: 4, kind: input, shape index: {}]   ;;  %s4664_s5 = inlined_call_operand.vmem [shape: f32[2,32], index: 5, kind: input, shape index: {}]   ;;  %s4665_s6 = inlined_call_operand.vmem [shape: f32[128,192], index: 6, kind: input, shape index: {}]   ;;  %s4666_s7 = inlined_call_operand.vmem [shape: f32[128,8], index: 7, kind: input, shape index: {}]   ;;  %s4667_s8 = inlined_call_operand.vmem [shape: f32[1,64], index: 8, kind: input, shape index: {}]   ;;  %s4668_s9 = inlined_call_operand.vmem [shape: f32[1,32], index: 9, kind: input, shape index: {}]   ;;  %s4669_s10 = inlined_call_operand.vmem [shape: f32[4,2,32], index: 10, kind: output, shape index: {0}]   ;;  %s4670_s11 = inlined_call_operand.hbm [shape: f32[4,2,16], index: 11, kind: output, shape index: {1}]   ;;  %s4671_s12 = inlined_call_operand.hbm [shape: f32[4,2,8], index: 12, kind: output, shape index: {2}]  }
   0x1   :  { %v3699_v0 = vld [vmem:[%s4665_s6 + $0x30] sm:$0xff]  ;;  %3161 = vmatprep.subr.mxu1 %v4672_v1  ;;  %v3705_v2 = vld [vmem:[%s4665_s6 + $0x20] sm:$0xff]  ;;  %3169 = vmatprep.mubr.msk.f32.mxu1 %vm3623_vm0, %v4672_v1 }
   0x2   :  { %v3712_v3 = vld [vmem:[%s4664_s5] sm:$0x3]  ;;  %3162 = vmatpush3.msra.mxu1 %v3699_v0 }
   0x3   :  { %208 = vrot.lane.b32.xlu0 %v3712_v3, %s3624_s27 }
   0x4   :  { %19 = vsyncpa [#allocation5], 0  ;;  %3163 = vmatprep.subr.mxu1 %v4672_v1  ;;  %v3721_v4 = vld [vmem:[%s4665_s6 + $0x10] sm:$0xff]  ;;  %301 = vmatprep.mubr.f32.mxu0 %v4672_v1  ;;  %v3729_v5 = vld [vmem:[%s4665_s6] sm:$0xff]  ;;  %vm49_vm1 = vcmask 261120   ;;  %s3625_s17 = smov 96  }
   0x5   :  { %3164 = vmatpush3.msra.mxu1 %v3705_v2  ;;  %v3742_v6 = vld [vmem:[%s4665_s6 + $0x70] sm:$0xff]  ;;  %v3747_v7 = vld [vmem:[%s4665_s6 + $0x60] sm:$0xff]  ;;  %v3780_v23 = vld [vmem:[%s4665_s6 + $0xb8] sm:$0xff]  ;;  %vm399_vm2 = vcmask 58368   ;;  %vm438_vm3 = vcmask 64512   ;;  %vm613_vm4 = vcmask 1041409  }
   0x6   :  { %3165 = vmatprep.subr.mxu1 %v4672_v1  ;;  %v3756_v8 = vld [vmem:[%s4665_s6 + $0x50] sm:$0xff]  ;;  %v3763_v9 = vld [vmem:[%s4665_s6 + $0x40] sm:$0xff]  ;;  %v3790_v25 = vld [vmem:[%s4665_s6 + $0xa8] sm:$0xff]  ;;  %261 = vmatprep.subr.mxu0 %v3780_v23  ;;  %s3627_s26 = smov 64   ;;  %vm750_vm5 = vcmask 254976   ;;  %vm759_vm6 = vcmask 123904  }
   0x7   :  { %3166 = vmatpush3.msra.mxu1 %v3721_v4  ;;  %v41_v10 = vld [vmem:[%s4659_s0] sm:$0x3]  ;;  %v3785_v24 = vld [vmem:[%s4665_s6 + $0xb0] sm:$0xff]  ;;  %v3805_v28 = vld [vmem:[%s4665_s6 + $0x98] sm:$0xff] }
   0x8   :  { %3167 = vmatprep.subr.mxu1 %v4672_v1  ;;  %v42_v19 = vld [vmem:[%s4660_s1] sm:$0x3]  ;;  %262 = vmatpush1.msra.mxu0 %v3785_v24  ;;  %v3811_v29 = vld [vmem:[%s4665_s6 + $0x90] sm:$0xff]  ;;  %v3817_v30 = vld [vmem:[%s4665_s6 + $0x88] sm:$0xff] }
   0x9   :  { %3168 = vmatpush3.msra.mxu1 %v3729_v5  ;;  %v3796_v26 = vld [vmem:[%s4665_s6 + $0xa0] sm:$0xff]  ;;  %263 = vmatprep.subr.mxu0 %v3790_v25  ;;  %v3829_v33 = vld [vmem:[%s4666_s7 + $0x78] sm:$0xff]  ;;  %v3834_v34 = vld [vmem:[%s4666_s7 + $0x70] sm:$0xff] }
   0xa   :  { %3170 = vmatmul.mubr.msk.f32.vlgmr.msra.gmra.mxu1 %vm49_vm1, %v3712_v3  ;;  %3172 = vmatprep.subr.mxu1 %v4672_v1  ;;  %v3823_v31 = vld [vmem:[%s4665_s6 + $0x80] sm:$0xff]  ;;  %v3842_v35 = vld [vmem:[%s4666_s7 + $0x68] sm:$0xff]  ;;  %v3856_v41 = vld [vmem:[%s4666_s7 + $0x58] sm:$0xff] }
   0xb   :  { %3180 = vmatprep.mubr.msk.f32.mxu1 %vm3623_vm0, %v4672_v1  ;;  %3173 = vmatpush3.msra.mxu1 %v3742_v6  ;;  %v3849_v38 = vld [vmem:[%s4666_s7 + $0x60] sm:$0xff]  ;;  %v3863_v43 = vld [vmem:[%s4666_s7 + $0x50] sm:$0xff]  ;;  %v3889_v50 = vld [vmem:[%s4666_s7 + $0x48] sm:$0xff] }
   0xc   :  { %3174 = vmatprep.subr.mxu1 %v4672_v1  ;;  %264 = vmatpush1.msra.mxu0 %v3796_v26  ;;  %v3873_v44 = vld [vmem:[%s4661_s2] sm:$0x3]  ;;  %v3903_v52 = vld [vmem:[%s4666_s7 + $0x38] sm:$0xff]  ;;  %v3908_v53 = vld [vmem:[%s4666_s7 + $0x30] sm:$0xff] }
   0xd   :  { %3175 = vmatpush3.msra.mxu1 %v3747_v7  ;;  %265 = vmatprep.subr.mxu0 %v3805_v28  ;;  %v4674_v45 = vsub.f32 1.0, %v3873_v44  ;;  %v3896_v51 = vld [vmem:[%s4666_s7 + $0x40] sm:$0xff]  ;;  %v3915_v54 = vld [vmem:[%s4666_s7 + $0x28] sm:$0xff]  ;;  %v3929_v56 = vld [vmem:[%s4666_s7 + $0x18] sm:$0xff] }
   0xe   :  { %3176 = vmatprep.subr.mxu1 %v4672_v1  ;;  %266 = vmatpush1.msra.mxu0 %v3811_v29  ;;  %v3922_v55 = vld [vmem:[%s4666_s7 + $0x20] sm:$0xff]  ;;  %v3936_v57 = vld [vmem:[%s4666_s7 + $0x10] sm:$0xff]  ;;  %v3943_v58 = vld [vmem:[%s4666_s7 + $0x8] sm:$0xff] }
   0xf   :  { %3177 = vmatpush3.msra.mxu1 %v3756_v8  ;;  %267 = vmatprep.subr.mxu0 %v3817_v30  ;;  %v224_v46 = vmul.f32 %v4674_v45, %v3712_v3  ;;  %v3950_v59 = vld [vmem:[%s4666_s7] sm:$0xff] }
  0x10   :  { %3178 = vmatprep.subr.mxu1 %v4672_v1  ;;  %268 = vmatpush1.msra.mxu0 %v3823_v31  ;;  %v308_v60 = vld [vmem:[%s4662_s3] sm:$0x3]  ;;  %v311_v63 = vld [vmem:[%s4662_s3 + $0x2] sm:$0x3] }
  0x11   :  { %3179 = vmatpush3.msra.mxu1 %v3763_v9  ;;  %3218 = vmatprep.subr.mxu0 %v4672_v1 }
  0x12   :  { %3183 = vmatprep.subr.mxu1 %v4672_v1 }
  0x75   :  { %v209_v32 = vpop.permute.xlu0 %208 }
  0xca   :  { %v119_v11 = vpop.f32.mrf.mxu1 }
  0xcb   :  { %v120_v12 = vadd.f32 %v119_v11, %v41_v10 }
  0xcc   :  { %v3171_v13 = vpop.f32.mrf.mxu1 }
  0xcd   :  { %v2962_v14 = vmul.f32 -1.442695, %v120_v12 }
  0xcf   :  { %3482 = vpow2.f32 %v2962_v14 }
  0xdc   :  { %v3483_v15 = vpop.eup %3482 }
  0xdd   :  { %v126_v16 = vadd.f32 1.0, %v3483_v15 }
  0xdf   :  { %3484 = vrcp.f32 %v126_v16 }
  0xec   :  { %v3485_v17 = vpop.eup %3484 }
  0xed   :  { %v129_v18 = vmul.f32 %v3485_v17, %v3712_v3  ;;  %v212_v36 = vsub.f32 1.0, %v3485_v17  ;;  %v211_v39 = vmul.f32 %v3485_v17, %v209_v32  ;;  %v406_v17 = vld [vmem:[%s4662_s3 + $0x4] sm:$0x3] }
  0xef   :  { %3181 = vmatmul.mubr.msk.f32.vlgmr.msra.gmra.mxu1 %vm49_vm1, %v129_v18 }
  0xf0   :  { %3215 = vmatprep.mubr.msk.f32.mxu1 %vm3623_vm0, %v4672_v1  ;;  %3184 = vmatpush3.msra.mxu1 %v3829_v33 }
  0xf1   :  { %3185 = vmatprep.subr.mxu1 %v4672_v1 }
  0xf2   :  { %3186 = vmatpush3.msra.mxu1 %v3834_v34 }
  0xf3   :  { %3187 = vmatprep.subr.mxu1 %v4672_v1 }
  0xf4   :  { %3188 = vmatpush3.msra.mxu1 %v3842_v35 }
  0xf5   :  { %3189 = vmatprep.subr.mxu1 %v4672_v1 }
  0xf6   :  { %3190 = vmatpush3.msra.mxu1 %v3849_v38 }
  0xf7   :  { %3191 = vmatprep.subr.mxu1 %v4672_v1 }
  0xf8   :  { %3192 = vmatpush3.msra.mxu1 %v3856_v41 }
  0xf9   :  { %3193 = vmatprep.subr.mxu1 %v4672_v1 }
  0xfa   :  { %3194 = vmatpush3.msra.mxu1 %v3863_v43 }
  0xfb   :  { %3195 = vmatprep.subr.mxu1 %v4672_v1 }
  0xfc   :  { %3196 = vmatpush3.msra.mxu1 %v3889_v50 }
  0xfd   :  { %3197 = vmatprep.subr.mxu1 %v4672_v1 }
  0xfe   :  { %3198 = vmatpush3.msra.mxu1 %v3896_v51 }
  0xff   :  { %3199 = vmatprep.subr.mxu1 %v4672_v1 }
 0x100   :  { %3200 = vmatpush3.msra.mxu1 %v3903_v52 }
 0x101   :  { %3201 = vmatprep.subr.mxu1 %v4672_v1 }
 0x102   :  { %3202 = vmatpush3.msra.mxu1 %v3908_v53 }
 0x103   :  { %3203 = vmatprep.subr.mxu1 %v4672_v1 }
 0x104   :  { %3204 = vmatpush3.msra.mxu1 %v3915_v54 }
 0x105   :  { %3205 = vmatprep.subr.mxu1 %v4672_v1 }
 0x106   :  { %3206 = vmatpush3.msra.mxu1 %v3922_v55 }
 0x107   :  { %3207 = vmatprep.subr.mxu1 %v4672_v1 }
 0x108   :  { %3208 = vmatpush3.msra.mxu1 %v3929_v56 }
 0x109   :  { %3209 = vmatprep.subr.mxu1 %v4672_v1 }
 0x10a   :  { %3210 = vmatpush3.msra.mxu1 %v3936_v57 }
 0x10b   :  { %3211 = vmatprep.subr.mxu1 %v4672_v1 }
 0x10c   :  { %3212 = vmatpush3.msra.mxu1 %v3943_v58 }
 0x10d   :  { %3213 = vmatprep.subr.mxu1 %v4672_v1 }
 0x10e   :  { %3214 = vmatpush3.msra.mxu1 %v3950_v59 }
 0x10f   :  { %984 = vmatprep.subr.mxu1 %v3780_v23 }
 0x1af   :  { %v203_v20 = vpop.f32.mrf.mxu1 }
 0x1b0   :  { %v204_v21 = vadd.f32 %v203_v20, %v42_v19 }
 0x1b1   :  { %v3182_v22 = vpop.f32.mrf.mxu1 }
 0x1b2   :  { %3486 = vtanh.f32 %v204_v21  ;;  %v3979_v21 = vld [vmem:[%s4663_s4] sm:$0xff] }
 0x1bf   :  { %v3487_v27 = vpop.eup %3486 }
 0x1c0   :  { %214 = vrot.lane.b32.xlu0 %v3487_v27, %s3624_s27  ;;  %v3626_v27 = vmov 1966171168  }
 0x1c1   :  { %v415_v32 = vunpack.c.l.s4 %v3626_v27 }
 0x232   :  { %v215_v37 = vpop.permute.xlu0 %214 }
 0x233   :  { %v217_v40 = vmul.f32 %v215_v37, %v212_v36  ;;  %v417_v36 = vlaneseq  ;;  %v416_v37 = vunpack.c.0.s8 %v415_v32 }
 0x235   :  { %v218_v42 = vadd.f32 %v217_v40, %v211_v39  ;;  %v418_v39 = vshrl.u32 %v417_v36, 7 }
 0x237   :  { %220 = vrot.lane.b32.xlu1 %v218_v42, %s3625_s17  ;;  %v3983_v40 = vsub.s32 %v416_v37, %v418_v39 }
 0x2a9   :  { %v221_v47 = vpop.permute.xlu1 %220 }
 0x2aa   :  { %v223_v48 = vmul.f32 %v221_v47, %v3873_v44 }
 0x2ac   :  { %v3880_v49 = vadd.f32 %v224_v46, %v223_v48 }
 0x2ae   :  { %2964 = vmatmul.mubr.msk.f32.vlgmr.msra.gmra.mxu0 %vm49_vm1, %v3880_v49 }
 0x2af   :  { %3220 = vmatprep.mubr.msk.f32.mxu0 %vm3623_vm0, %v4672_v1  ;;  %3219 = vmatpush3.msra.mxu0 %v3979_v21 }
 0x2b0   :  { %3223 = vmatprep.subr.mxu0 %v4672_v1 }
 0x36e   :  { %v303_v61 = vpop.f32.mrf.mxu0 }
 0x36f   :  { %v309_v62 = vadd.f32 %v308_v60, %v303_v61  ;;  %v3991_v60 = vld [vmem:[%s4663_s4 + $0x8] sm:$0xff] }
 0x371   :  { %3488 = vtanh.f32 %v309_v62 }
 0x37e   :  { %v3489_v3 = vpop.eup %3488 }
 0x37f   :  { %v312_v10 = vmul.f32 %v3489_v3, %v311_v63  ;;  %v4005_v63 = vld [vmem:[%s4665_s6 + $0xf0] sm:$0xff]  ;;  %v4010_v3 = vld [vmem:[%s4665_s6 + $0xe0] sm:$0xff] }
 0x381   :  { %3216 = vmatmul.mubr.f32.vlgmr.msra.gmra.mxu1 %v312_v10  ;;  %v4017_v10 = vld [vmem:[%s4665_s6 + $0xd0] sm:$0xff] }
 0x382   :  { %985 = vmatpush1.msra.mxu1 %v3785_v24  ;;  %1024 = vmatprep.mubr.f32.mxu1 %v4672_v1 }
 0x383   :  { %986 = vmatprep.subr.mxu1 %v3790_v25 }
 0x384   :  { %987 = vmatpush1.msra.mxu1 %v3796_v26 }
 0x385   :  { %988 = vmatprep.subr.mxu1 %v3805_v28 }
 0x386   :  { %989 = vmatpush1.msra.mxu1 %v3811_v29 }
 0x387   :  { %990 = vmatprep.subr.mxu1 %v3817_v30 }
 0x388   :  { %991 = vmatpush1.msra.mxu1 %v3823_v31 }
 0x389   :  { %3296 = vmatprep.subr.mxu1 %v4672_v1 }
 0x441   :  { %v395_v11 = vpop.f32.mrf.mxu1 }
 0x442   :  { %v400_v12 = vsel %vm399_vm2, %v395_v11, -inf }
 0x443   :  { %401 = vmax.xlane.f32.xlu1 %v400_v12  ;;  %v3217_v13 = vpop.f32.mrf.mxu1  ;;  %v305_v12 = vpop.f32.mrf.mxu0 }
 0x4cc   :  { %v402_v14 = vpop.xlane.xlu1 %401 }
 0x4cd   :  { %v403_v15 = vsub.f32 %v395_v11, %v402_v14  ;;  %v4024_v11 = vld [vmem:[%s4665_s6 + $0xc0] sm:$0xff] }
 0x4ce   :  { %v4035_v14 = vld [vmem:[%s4667_s8] ss:$0 sm:$0xff] }
 0x4cf   :  { %v404_v16 = vmul.f32 1.442695, %v403_v15 }
 0x4d1   :  { %3490 = vpow2.f32 %v404_v16 }
 0x4de   :  { %v3491_v18 = vpop.eup %3490 }
 0x4df   :  { %v407_v19 = vmul.f32 %v3491_v18, %v406_v17  ;;  %v584_v17 = vrot.slane %v305_v12, 1 }
 0x4e1   :  { %v408_v20 = vsel %vm399_vm2, %v407_v19, 0.0 }
 0x4e2   :  { %409 = vadd.xlane.f32.xlu0 %v408_v20 }
 0x56b   :  { %v410_v22 = vpop.xlane.xlu0 %409 }
 0x56c   :  { %3492 = vrcp.f32 %v410_v22 }
 0x579   :  { %v3493_v42 = vpop.eup %3492 }
 0x57a   :  { %v412_v46 = vmul.f32 %v3493_v42, %v407_v19 }
 0x57c   :  { %761 = vst.msk [vmem:[#allocation4] sm:$0x3] %vm399_vm2, %v412_v46  ;;  %v420_v47 = vrot.slane %v412_v46, %v3983_v40 }
 0x57e   :  { %v428_v48 = vrot.slane %v420_v47, %v3983_v40  ;;  %v421_v61 = vcombine.high %v420_v47, %v420_v47 }
 0x580   :  { %3221 = vmatmul.mubr.msk.f32.vlgmr.msra.gmra.mxu0 %vm438_vm3, %v428_v48  ;;  %v435_v62 = vrot.slane %v421_v61, %v3983_v40 }
 0x581   :  { %3224 = vmatpush3.msra.mxu0 %v3991_v60  ;;  %3225 = vmatprep.mubr.msk.f32.mxu0 %vm3623_vm0, %v4672_v1 }
 0x582   :  { %3228 = vmatprep.subr.mxu0 %v4672_v1 }
 0x584   :  { %3226 = vmatmul.mubr.msk.f32.vlgmr.msra.gmra.mxu0 %vm438_vm3, %v435_v62 }
 0x585   :  { %3236 = vmatprep.mubr.msk.f32.mxu0 %vm3623_vm0, %v4672_v1  ;;  %3229 = vmatpush3.msra.mxu0 %v4005_v63 }
 0x586   :  { %3230 = vmatprep.subr.mxu0 %v4672_v1 }
 0x587   :  { %3231 = vmatpush3.msra.mxu0 %v4010_v3 }
 0x588   :  { %3232 = vmatprep.subr.mxu0 %v4672_v1 }
 0x589   :  { %3233 = vmatpush3.msra.mxu0 %v4017_v10 }
 0x58a   :  { %3234 = vmatprep.subr.mxu0 %v4672_v1 }
 0x58b   :  { %3235 = vmatpush3.msra.mxu0 %v4024_v11 }
 0x58c   :  { %3239 = vmatprep.subr.mxu0 %v4672_v1 }
 0x640   :  { %v4030_v13 = vpop.f32.mrf.mxu0 }
 0x641   :  { %v587_v15 = vadd.f32 %v4030_v13, %v305_v12 }
 0x642   :  { %v3222_v16 = vpop.f32.mrf.mxu0 }
 0x643   :  { %v596_v18 = vadd.f32 %v4035_v14, %v587_v15 }
 0x644   :  { %v4039_v19 = vpop.f32.mrf.mxu0 }
 0x645   :  { %v2968_v20 = vmul.f32 -1.442695, %v596_v18  ;;  %v588_v22 = vadd.f32 %v584_v17, %v4039_v19  ;;  %v4060_v18 = vld [vmem:[%s4668_s9] ss:$0 sm:$0xff] }
 0x646   :  { %v3227_v27 = vpop.f32.mrf.mxu0 }
 0x647   :  { %v597_v32 = vadd.f32 %v4035_v14, %v588_v22  ;;  %3494 = vpow2.f32 %v2968_v20  ;;  %v717_v20 = vrot.slane %v3880_v49, 1 }
 0x649   :  { %v2969_v36 = vmul.f32 -1.442695, %v597_v32 }
 0x64b   :  { %3496 = vpow2.f32 %v2969_v36 }
 0x654   :  { %v3495_v37 = vpop.eup %3494 }
 0x655   :  { %v604_v42 = vadd.f32 1.0, %v3495_v37 }
 0x658   :  { %v3497_v39 = vpop.eup %3496 }
 0x659   :  { %v605_v46 = vadd.f32 1.0, %v3497_v39 }
 0x65b   :  { %3498 = vrcp.f32 %v605_v46 }
 0x65c   :  { %3500 = vrcp.f32 %v604_v42 }
 0x668   :  { %v3499_v47 = vpop.eup %3498 }
 0x669   :  { %v612_v48 = vrot.slane %v3499_v47, 7  ;;  %v3501_v61 = vpop.eup %3500 }
 0x66b   :  { %v614_v62 = vsel %vm613_vm4, %v612_v48, %v3501_v61 }
 0x66c   :  { %v616_v12 = vmul.f32 %v614_v62, %v3880_v49 }
 0x66e   :  { %3237 = vmatmul.mubr.msk.f32.vlgmr.msra.gmra.mxu0 %vm49_vm1, %v616_v12  ;;  %v727_v12 = vsub.f32 1.0, %v3499_v47 }
 0x66f   :  { %3240 = vmatpush3.msra.mxu0 %v3699_v0  ;;  %3247 = vmatprep.mubr.msk.f32.mxu0 %vm3623_vm0, %v4672_v1 }
 0x670   :  { %3241 = vmatprep.subr.mxu0 %v4672_v1 }
 0x671   :  { %3242 = vmatpush3.msra.mxu0 %v3705_v2 }
 0x672   :  { %3243 = vmatprep.subr.mxu0 %v4672_v1 }
 0x673   :  { %3244 = vmatpush3.msra.mxu0 %v3721_v4 }
 0x674   :  { %3245 = vmatprep.subr.mxu0 %v4672_v1 }
 0x675   :  { %3246 = vmatpush3.msra.mxu0 %v3729_v5 }
 0x676   :  { %3250 = vmatprep.subr.mxu0 %v4672_v1  ;;  %v726_v1 = vsub.f32 1.0, %v3501_v61 }
 0x72e   :  { %v690_v15 = vpop.f32.mrf.mxu0 }
 0x72f   :  { %v695_v16 = vrot.slane %v690_v15, 1  ;;  %696 = vrot.lane.b32.xlu1 %v690_v15, %s3627_s26 }
 0x730   :  { %v3238_v17 = vpop.f32.mrf.mxu0 }
 0x731   :  { %698 = vrot.lane.b32.xlu0 %v695_v16, %s3627_s26 }
 0x733   :  { %710 = vrot.lane.b32.xlu1 %v4060_v18, %s3627_s26 }
 0x735   :  { %720 = vrot.lane.b32.xlu0 %v717_v20, %s3624_s27 }
 0x739   :  { %718 = vrot.lane.b32.xlu0 %v3880_v49, %s3624_s27 }
 0x7a1   :  { %v697_v22 = vpop.permute.xlu1 %696 }
 0x7a2   :  { %v702_v39 = vadd.f32 %v697_v22, %v4030_v13 }
 0x7a3   :  { %v699_v27 = vpop.permute.xlu0 %698 }
 0x7a4   :  { %v703_v32 = vadd.f32 %v699_v27, %v4039_v19 }
 0x7a5   :  { %v711_v36 = vpop.permute.xlu1 %710 }
 0x7a6   :  { %v714_v37 = vadd.f32 %v711_v36, %v703_v32  ;;  %v713_v42 = vadd.f32 %v711_v36, %v702_v39 }
 0x7a7   :  { %v721_v62 = vpop.permute.xlu0 %720 }
 0x7a8   :  { %3502 = vtanh.f32 %v714_v37  ;;  %v725_v16 = vmul.f32 %v3499_v47, %v721_v62 }
 0x7a9   :  { %3504 = vtanh.f32 %v713_v42 }
 0x7ab   :  { %v719_v20 = vpop.permute.xlu0 %718 }
 0x7ac   :  { %v724_v45 = vmul.f32 %v3501_v61, %v719_v20 }
 0x7b5   :  { %v3503_v46 = vpop.eup %3502 }
 0x7b6   :  { %732 = vrot.lane.b32.xlu1 %v3503_v46, %s3625_s17  ;;  %v3505_v48 = vpop.eup %3504  ;;  %v4675_v46 = vsub.f32 1.0, %v3873_v44 }
 0x7ba   :  { %730 = vrot.lane.b32.xlu1 %v3505_v48, %s3625_s17  ;;  %v748_v48 = vmul.f32 %v3880_v49, %v4675_v46 }
 0x828   :  { %v733_v15 = vpop.permute.xlu1 %732 }
 0x829   :  { %v737_v17 = vmul.f32 %v733_v15, %v727_v12 }
 0x82b   :  { %v739_v27 = vadd.f32 %v737_v17, %v725_v16 }
 0x82c   :  { %v731_v32 = vpop.permute.xlu1 %730 }
 0x82d   :  { %v736_v22 = vmul.f32 %v731_v32, %v726_v1  ;;  %v742_v36 = vrot.slane %v739_v27, 7  ;;  %v4676_v1 = vmov 0.0   ;;  %v2973_v27 = vld [vmem:[%s4660_s1 + $0x2] sm:$0x3] }
 0x82f   :  { %v738_v37 = vadd.f32 %v736_v22, %v724_v45 }
 0x831   :  { %v743_v39 = vsel %vm613_vm4, %v742_v36, %v738_v37 }
 0x832   :  { %744 = vrot.lane.b32.xlu0 %v743_v39, %s3625_s17 }
 0x8a4   :  { %v745_v42 = vpop.permute.xlu0 %744 }
 0x8a5   :  { %v747_v47 = vmul.f32 %v745_v42, %v3873_v44  ;;  %v2972_v44 = vld [vmem:[%s4659_s0 + $0x2] sm:$0x3] }
 0x8a7   :  { %v4079_v62 = vadd.f32 %v748_v48, %v747_v47 }
 0x8a9   :  { %931 = vrot.lane.b32.xlu1 %v4079_v62, %s3624_s27  ;;  %3248 = vmatmul.mubr.msk.f32.vlgmr.msra.gmra.mxu0 %vm49_vm1, %v4079_v62  ;;  %751 = vst.msk [vmem:[%s4669_s10] sm:$0x3] %vm750_vm5, %v4079_v62 }
 0x8aa   :  { %3251 = vmatpush3.msra.mxu0 %v3742_v6  ;;  %3258 = vmatprep.mubr.msk.f32.mxu0 %vm3623_vm0, %v4676_v1 }
 0x8ab   :  { %3252 = vmatprep.subr.mxu0 %v4676_v1 }
 0x8ac   :  { %3253 = vmatpush3.msra.mxu0 %v3747_v7 }
 0x8ad   :  { %3254 = vmatprep.subr.mxu0 %v4676_v1 }
 0x8ae   :  { %3255 = vmatpush3.msra.mxu0 %v3756_v8 }
 0x8af   :  { %3256 = vmatprep.subr.mxu0 %v4676_v1 }
 0x8b0   :  { %3257 = vmatpush3.msra.mxu0 %v3763_v9 }
 0x8b1   :  { %3261 = vmatprep.subr.mxu0 %v4676_v1 }
 0x91b   :  { %v932_v42 = vpop.permute.xlu1 %931 }
 0x969   :  { %v842_v45 = vpop.f32.mrf.mxu0 }
 0x96a   :  { %v843_v49 = vadd.f32 %v2972_v44, %v842_v45 }
 0x96b   :  { %v3249_v61 = vpop.f32.mrf.mxu0 }
 0x96c   :  { %v2976_v12 = vmul.f32 -1.442695, %v843_v49 }
 0x96e   :  { %3506 = vpow2.f32 %v2976_v12 }
 0x97b   :  { %v3507_v15 = vpop.eup %3506 }
 0x97c   :  { %v849_v16 = vadd.f32 1.0, %v3507_v15 }
 0x97e   :  { %3508 = vrcp.f32 %v849_v16  ;;  %v1031_v16 = vld [vmem:[%s4662_s3] sm:$0x3] }
 0x98b   :  { %v3509_v17 = vpop.eup %3508 }
 0x98c   :  { %v852_v20 = vmul.f32 %v3509_v17, %v4079_v62  ;;  %v935_v39 = vsub.f32 1.0, %v3509_v17  ;;  %v934_v48 = vmul.f32 %v3509_v17, %v932_v42 }
 0x98e   :  { %3259 = vmatmul.mubr.msk.f32.vlgmr.msra.gmra.mxu0 %vm49_vm1, %v852_v20  ;;  %v1034_v20 = vld [vmem:[%s4662_s3 + $0x2] sm:$0x3] }
 0x98f   :  { %3262 = vmatpush3.msra.mxu0 %v3829_v33  ;;  %3293 = vmatprep.mubr.msk.f32.mxu0 %vm3623_vm0, %v4676_v1 }
 0x990   :  { %3263 = vmatprep.subr.mxu0 %v4676_v1 }
 0x991   :  { %3264 = vmatpush3.msra.mxu0 %v3834_v34 }
 0x992   :  { %3265 = vmatprep.subr.mxu0 %v4676_v1 }
 0x993   :  { %3266 = vmatpush3.msra.mxu0 %v3842_v35 }
 0x994   :  { %3267 = vmatprep.subr.mxu0 %v4676_v1 }
 0x995   :  { %3268 = vmatpush3.msra.mxu0 %v3849_v38 }
 0x996   :  { %3269 = vmatprep.subr.mxu0 %v4676_v1 }
 0x997   :  { %3270 = vmatpush3.msra.mxu0 %v3856_v41 }
 0x998   :  { %3271 = vmatprep.subr.mxu0 %v4676_v1 }
 0x999   :  { %3272 = vmatpush3.msra.mxu0 %v3863_v43 }
 0x99a   :  { %3273 = vmatprep.subr.mxu0 %v4676_v1 }
 0x99b   :  { %3274 = vmatpush3.msra.mxu0 %v3889_v50 }
 0x99c   :  { %3275 = vmatprep.subr.mxu0 %v4676_v1 }
 0x99d   :  { %3276 = vmatpush3.msra.mxu0 %v3896_v51 }
 0x99e   :  { %3277 = vmatprep.subr.mxu0 %v4676_v1 }
 0x99f   :  { %3278 = vmatpush3.msra.mxu0 %v3903_v52 }
 0x9a0   :  { %3279 = vmatprep.subr.mxu0 %v4676_v1 }
 0x9a1   :  { %3280 = vmatpush3.msra.mxu0 %v3908_v53 }
 0x9a2   :  { %3281 = vmatprep.subr.mxu0 %v4676_v1 }
 0x9a3   :  { %3282 = vmatpush3.msra.mxu0 %v3915_v54 }
 0x9a4   :  { %3283 = vmatprep.subr.mxu0 %v4676_v1 }
 0x9a5   :  { %3284 = vmatpush3.msra.mxu0 %v3922_v55 }
 0x9a6   :  { %3285 = vmatprep.subr.mxu0 %v4676_v1 }
 0x9a7   :  { %3286 = vmatpush3.msra.mxu0 %v3929_v56 }
 0x9a8   :  { %3287 = vmatprep.subr.mxu0 %v4676_v1 }
 0x9a9   :  { %3288 = vmatpush3.msra.mxu0 %v3936_v57 }
 0x9aa   :  { %3289 = vmatprep.subr.mxu0 %v4676_v1 }
 0x9ab   :  { %3290 = vmatpush3.msra.mxu0 %v3943_v58 }
 0x9ac   :  { %3291 = vmatprep.subr.mxu0 %v4676_v1 }
 0x9ad   :  { %3292 = vmatpush3.msra.mxu0 %v3950_v59 }
 0x9ae   :  { %1705 = vmatprep.subr.mxu0 %v3780_v23  ;;  %v4147_v23 = vld [vmem:[%s4661_s2 + $0x2] sm:$0x3] }
 0x9af   :  { %v768_v45 = vsub.f32 1.0, %v4147_v23 }
 0x9b1   :  { %v947_v61 = vmul.f32 %v768_v45, %v4079_v62 }
 0xa4e   :  { %v926_v32 = vpop.f32.mrf.mxu0 }
 0xa4f   :  { %v927_v22 = vadd.f32 %v2973_v27, %v926_v32 }
 0xa50   :  { %v3260_v36 = vpop.f32.mrf.mxu0 }
 0xa51   :  { %3510 = vtanh.f32 %v927_v22 }
 0xa5e   :  { %v3511_v37 = vpop.eup %3510 }
 0xa5f   :  { %937 = vrot.lane.b32.xlu0 %v3511_v37, %s3624_s27 }
 0xad1   :  { %v938_v46 = vpop.permute.xlu0 %937 }
 0xad2   :  { %v940_v47 = vmul.f32 %v938_v46, %v935_v39 }
 0xad4   :  { %v941_v44 = vadd.f32 %v940_v47, %v934_v48 }
 0xad6   :  { %943 = vrot.lane.b32.xlu1 %v941_v44, %s3625_s17 }
 0xb48   :  { %v944_v49 = vpop.permute.xlu1 %943 }
 0xb49   :  { %v946_v12 = vmul.f32 %v4147_v23, %v944_v49 }
 0xb4b   :  { %v4154_v15 = vadd.f32 %v947_v61, %v946_v12 }
 0xb4d   :  { %2978 = vmatmul.mubr.msk.f32.vlgmr.msra.gmra.mxu1 %vm49_vm1, %v4154_v15 }
 0xb4e   :  { %3297 = vmatpush3.msra.mxu1 %v3979_v21  ;;  %3298 = vmatprep.mubr.msk.f32.mxu1 %vm3623_vm0, %v4676_v1 }
 0xb4f   :  { %3301 = vmatprep.subr.mxu1 %v4676_v1 }
 0xc0d   :  { %v1026_v17 = vpop.f32.mrf.mxu1 }
 0xc0e   :  { %v1032_v62 = vadd.f32 %v1031_v16, %v1026_v17 }
 0xc0f   :  { %v1028_v61 = vpop.f32.mrf.mxu1 }
 0xc10   :  { %3512 = vtanh.f32 %v1032_v62  ;;  %v1305_v62 = vrot.slane %v1028_v61, 1 }
 0xc1d   :  { %v3513_v27 = vpop.eup %3512 }
 0xc1e   :  { %v1035_v32 = vmul.f32 %v3513_v27, %v1034_v20 }
 0xc20   :  { %3294 = vmatmul.mubr.f32.vlgmr.msra.gmra.mxu0 %v1035_v32 }
 0xc21   :  { %1706 = vmatpush1.msra.mxu0 %v3785_v24  ;;  %1745 = vmatprep.mubr.f32.mxu0 %v4676_v1 }
 0xc22   :  { %1707 = vmatprep.subr.mxu0 %v3790_v25 }
 0xc23   :  { %1708 = vmatpush1.msra.mxu0 %v3796_v26  ;;  %v1128_v26 = vld [vmem:[%s4662_s3 + $0x4] sm:$0x3] }
 0xc24   :  { %1709 = vmatprep.subr.mxu0 %v3805_v28 }
 0xc25   :  { %1710 = vmatpush1.msra.mxu0 %v3811_v29 }
 0xc26   :  { %1711 = vmatprep.subr.mxu0 %v3817_v30 }
 0xc27   :  { %1712 = vmatpush1.msra.mxu0 %v3823_v31 }
 0xc28   :  { %3374 = vmatprep.subr.mxu0 %v4676_v1 }
 0xce0   :  { %v1118_v22 = vpop.f32.mrf.mxu0 }
 0xce1   :  { %v1122_v36 = vsel %vm399_vm2, %v1118_v22, -inf }
 0xce2   :  { %1123 = vmax.xlane.f32.xlu0 %v1122_v36  ;;  %v3295_v24 = vpop.f32.mrf.mxu0 }
 0xd6b   :  { %v1124_v37 = vpop.xlane.xlu0 %1123 }
 0xd6c   :  { %v1125_v39 = vsub.f32 %v1118_v22, %v1124_v37 }
 0xd6e   :  { %v1126_v25 = vmul.f32 1.442695, %v1125_v39 }
 0xd70   :  { %3514 = vpow2.f32 %v1126_v25 }
 0xd7d   :  { %v3515_v28 = vpop.eup %3514 }
 0xd7e   :  { %v1129_v29 = vmul.f32 %v3515_v28, %v1128_v26 }
 0xd80   :  { %v1130_v30 = vsel %vm399_vm2, %v1129_v29, 0.0 }
 0xd81   :  { %1131 = vadd.xlane.f32.xlu1 %v1130_v30 }
 0xe0a   :  { %v1132_v31 = vpop.xlane.xlu1 %1131 }
 0xe0b   :  { %3516 = vrcp.f32 %v1132_v31 }
 0xe18   :  { %v3517_v42 = vpop.eup %3516 }
 0xe19   :  { %v1134_v46 = vmul.f32 %v3517_v42, %v1129_v29 }
 0xe1b   :  { %1482 = vst.msk [vmem:[#allocation4 + $0x2] sm:$0x3] %vm399_vm2, %v1134_v46  ;;  %v1142_v48 = vrot.slane %v1134_v46, %v3983_v40 }
 0xe1d   :  { %v1150_v47 = vrot.slane %v1142_v48, %v3983_v40  ;;  %v1143_v44 = vcombine.high %v1142_v48, %v1142_v48 }
 0xe1f   :  { %3299 = vmatmul.mubr.msk.f32.vlgmr.msra.gmra.mxu1 %vm438_vm3, %v1150_v47  ;;  %v1157_v49 = vrot.slane %v1143_v44, %v3983_v40  ;;  %v1437_v44 = vrot.slane %v4154_v15, 1 }
 0xe20   :  { %3302 = vmatpush3.msra.mxu1 %v3991_v60  ;;  %3303 = vmatprep.mubr.msk.f32.mxu1 %vm3623_vm0, %v4676_v1 }
 0xe21   :  { %3306 = vmatprep.subr.mxu1 %v4676_v1 }
 0xe23   :  { %3304 = vmatmul.mubr.msk.f32.vlgmr.msra.gmra.mxu1 %vm438_vm3, %v1157_v49 }
 0xe24   :  { %3307 = vmatpush3.msra.mxu1 %v4005_v63  ;;  %3314 = vmatprep.mubr.msk.f32.mxu1 %vm3623_vm0, %v4676_v1 }
 0xe25   :  { %3308 = vmatprep.subr.mxu1 %v4676_v1 }
 0xe26   :  { %3309 = vmatpush3.msra.mxu1 %v4010_v3 }
 0xe27   :  { %3310 = vmatprep.subr.mxu1 %v4676_v1 }
 0xe28   :  { %3311 = vmatpush3.msra.mxu1 %v4017_v10 }
 0xe29   :  { %3312 = vmatprep.subr.mxu1 %v4676_v1 }
 0xe2a   :  { %3313 = vmatpush3.msra.mxu1 %v4024_v11 }
 0xe2b   :  { %3317 = vmatprep.subr.mxu1 %v4676_v1 }
 0xedf   :  { %v4202_v12 = vpop.f32.mrf.mxu1 }
 0xee0   :  { %v1308_v16 = vadd.f32 %v4202_v12, %v1028_v61 }
 0xee1   :  { %v3300_v17 = vpop.f32.mrf.mxu1 }
 0xee2   :  { %v1317_v20 = vadd.f32 %v4035_v14, %v1308_v16 }
 0xee3   :  { %v4206_v27 = vpop.f32.mrf.mxu1 }
 0xee4   :  { %v2982_v32 = vmul.f32 -1.442695, %v1317_v20  ;;  %v1309_v22 = vadd.f32 %v1305_v62, %v4206_v27 }
 0xee5   :  { %v3305_v36 = vpop.f32.mrf.mxu1 }
 0xee6   :  { %v1318_v24 = vadd.f32 %v4035_v14, %v1309_v22  ;;  %3518 = vpow2.f32 %v2982_v32 }
 0xee8   :  { %v2983_v37 = vmul.f32 -1.442695, %v1318_v24 }
 0xeea   :  { %3520 = vpow2.f32 %v2983_v37 }
 0xef3   :  { %v3519_v39 = vpop.eup %3518 }
 0xef4   :  { %v1325_v26 = vadd.f32 1.0, %v3519_v39 }
 0xef7   :  { %v3521_v25 = vpop.eup %3520 }
 0xef8   :  { %v1326_v28 = vadd.f32 1.0, %v3521_v25 }
 0xefa   :  { %3522 = vrcp.f32 %v1326_v28 }
 0xefb   :  { %3524 = vrcp.f32 %v1325_v26 }
 0xf07   :  { %v3523_v29 = vpop.eup %3522 }
 0xf08   :  { %v1333_v30 = vrot.slane %v3523_v29, 7  ;;  %v3525_v31 = vpop.eup %3524  ;;  %v1447_v22 = vsub.f32 1.0, %v3523_v29 }
 0xf09   :  { %v1446_v26 = vsub.f32 1.0, %v3525_v31 }
 0xf0a   :  { %v1334_v42 = vsel %vm613_vm4, %v1333_v30, %v3525_v31 }
 0xf0b   :  { %v1336_v46 = vmul.f32 %v1334_v42, %v4154_v15 }
 0xf0d   :  { %3315 = vmatmul.mubr.msk.f32.vlgmr.msra.gmra.mxu1 %vm49_vm1, %v1336_v46 }
 0xf0e   :  { %3318 = vmatpush3.msra.mxu1 %v3699_v0  ;;  %3325 = vmatprep.mubr.msk.f32.mxu1 %vm3623_vm0, %v4676_v1 }
 0xf0f   :  { %3319 = vmatprep.subr.mxu1 %v4676_v1 }
 0xf10   :  { %3320 = vmatpush3.msra.mxu1 %v3705_v2 }
 0xf11   :  { %3321 = vmatprep.subr.mxu1 %v4676_v1 }
 0xf12   :  { %3322 = vmatpush3.msra.mxu1 %v3721_v4 }
 0xf13   :  { %3323 = vmatprep.subr.mxu1 %v4676_v1 }
 0xf14   :  { %3324 = vmatpush3.msra.mxu1 %v3729_v5 }
 0xf15   :  { %3328 = vmatprep.subr.mxu1 %v4676_v1 }
 0xfcd   :  { %v1410_v48 = vpop.f32.mrf.mxu1 }
 0xfce   :  { %v1415_v47 = vrot.slane %v1410_v48, 1  ;;  %1416 = vrot.lane.b32.xlu1 %v1410_v48, %s3627_s26 }
 0xfcf   :  { %v3316_v0 = vpop.f32.mrf.mxu1 }
 0xfd0   :  { %1418 = vrot.lane.b32.xlu0 %v1415_v47, %s3627_s26 }
 0xfd2   :  { %1440 = vrot.lane.b32.xlu1 %v1437_v44, %s3624_s27  ;;  %v1468_v44 = vmul.f32 %v4154_v15, %v768_v45 }
 0xfd4   :  { %1430 = vrot.lane.b32.xlu0 %v4060_v18, %s3627_s26 }
 0xfd6   :  { %1438 = vrot.lane.b32.xlu1 %v4154_v15, %s3624_s27 }
0x1040   :  { %v1417_v4 = vpop.permute.xlu1 %1416 }
0x1041   :  { %v1422_v16 = vadd.f32 %v1417_v4, %v4202_v12 }
0x1042   :  { %v1419_v2 = vpop.permute.xlu0 %1418 }
0x1043   :  { %v1423_v5 = vadd.f32 %v1419_v2, %v4206_v27 }
0x1044   :  { %v1441_v32 = vpop.permute.xlu1 %1440 }
0x1045   :  { %v1445_v24 = vmul.f32 %v3523_v29, %v1441_v32 }
0x1046   :  { %v1431_v49 = vpop.permute.xlu0 %1430 }
0x1047   :  { %v1434_v61 = vadd.f32 %v1431_v49, %v1423_v5  ;;  %v1433_v17 = vadd.f32 %v1431_v49, %v1422_v16  ;;  %v1752_v49 = vld [vmem:[%s4662_s3] sm:$0x3] }
0x1048   :  { %v1439_v39 = vpop.permute.xlu1 %1438 }
0x1049   :  { %3526 = vtanh.f32 %v1434_v61  ;;  %v1444_v30 = vmul.f32 %v3525_v31, %v1439_v39  ;;  %v1849_v39 = vld [vmem:[%s4662_s3 + $0x4] sm:$0x3] }
0x104a   :  { %3528 = vtanh.f32 %v1433_v17  ;;  %v1755_v17 = vld [vmem:[%s4662_s3 + $0x2] sm:$0x3] }
0x1056   :  { %v3527_v62 = vpop.eup %3526 }
0x1057   :  { %1452 = vrot.lane.b32.xlu0 %v3527_v62, %s3625_s17  ;;  %v3529_v20 = vpop.eup %3528 }
0x105b   :  { %1450 = vrot.lane.b32.xlu0 %v3529_v20, %s3625_s17 }
0x10c9   :  { %v1453_v36 = vpop.permute.xlu0 %1452 }
0x10ca   :  { %v1457_v37 = vmul.f32 %v1453_v36, %v1447_v22 }
0x10cc   :  { %v1459_v25 = vadd.f32 %v1457_v37, %v1445_v24 }
0x10cd   :  { %v1451_v28 = vpop.permute.xlu0 %1450 }
0x10ce   :  { %v1456_v42 = vmul.f32 %v1451_v28, %v1446_v26  ;;  %v1462_v46 = vrot.slane %v1459_v25, 7 }
0x10d0   :  { %v1458_v48 = vadd.f32 %v1456_v42, %v1444_v30 }
0x10d2   :  { %v1463_v47 = vsel %vm613_vm4, %v1462_v46, %v1458_v48 }
0x10d3   :  { %1464 = vrot.lane.b32.xlu1 %v1463_v47, %s3625_s17 }
0x1145   :  { %v1465_v0 = vpop.permute.xlu1 %1464 }
0x1146   :  { %v1467_v29 = vmul.f32 %v4147_v23, %v1465_v0 }
0x1148   :  { %v4241_v2 = vadd.f32 %v1468_v44, %v1467_v29 }
0x114a   :  { %1652 = vrot.lane.b32.xlu0 %v4241_v2, %s3624_s27  ;;  %3326 = vmatmul.mubr.msk.f32.vlgmr.msra.gmra.mxu1 %vm49_vm1, %v4241_v2  ;;  %2986 = vst.msk [vmem:[%s4669_s10 + $0x2] sm:$0x3] %vm750_vm5, %v4241_v2 }
0x114b   :  { %3329 = vmatpush3.msra.mxu1 %v3742_v6  ;;  %3336 = vmatprep.mubr.msk.f32.mxu1 %vm3623_vm0, %v4676_v1  ;;  %v2987_v6 = vld [vmem:[%s4659_s0 + $0x4] sm:$0x3] }
0x114c   :  { %3330 = vmatprep.subr.mxu1 %v4676_v1 }
0x114d   :  { %3331 = vmatpush3.msra.mxu1 %v3747_v7 }
0x114e   :  { %3332 = vmatprep.subr.mxu1 %v4676_v1 }
0x114f   :  { %3333 = vmatpush3.msra.mxu1 %v3756_v8 }
0x1150   :  { %3334 = vmatprep.subr.mxu1 %v4676_v1 }
0x1151   :  { %3335 = vmatpush3.msra.mxu1 %v3763_v9  ;;  %v2988_v9 = vld [vmem:[%s4660_s1 + $0x4] sm:$0x3] }
0x1152   :  { %3339 = vmatprep.subr.mxu1 %v4676_v1 }
0x120a   :  { %v1563_v23 = vpop.f32.mrf.mxu1 }
0x120b   :  { %v1564_v45 = vadd.f32 %v2987_v6, %v1563_v23 }
0x120c   :  { %v3327_v15 = vpop.f32.mrf.mxu1 }
0x120d   :  { %v2991_v31 = vmul.f32 -1.442695, %v1564_v45 }
0x120f   :  { %3530 = vpow2.f32 %v2991_v31 }
0x121c   :  { %v3531_v7 = vpop.eup %3530 }
0x121d   :  { %v1570_v4 = vadd.f32 1.0, %v3531_v7 }
0x121f   :  { %3532 = vrcp.f32 %v1570_v4 }
0x122c   :  { %v3533_v5 = vpop.eup %3532 }
0x122d   :  { %v1573_v8 = vmul.f32 %v3533_v5, %v4241_v2 }
0x122f   :  { %3337 = vmatmul.mubr.msk.f32.vlgmr.msra.gmra.mxu1 %vm49_vm1, %v1573_v8 }
0x1230   :  { %3340 = vmatpush3.msra.mxu1 %v3829_v33  ;;  %3371 = vmatprep.mubr.msk.f32.mxu1 %vm3623_vm0, %v4676_v1 }
0x1231   :  { %3341 = vmatprep.subr.mxu1 %v4676_v1 }
0x1232   :  { %3342 = vmatpush3.msra.mxu1 %v3834_v34 }
0x1233   :  { %3343 = vmatprep.subr.mxu1 %v4676_v1 }
0x1234   :  { %3344 = vmatpush3.msra.mxu1 %v3842_v35 }
0x1235   :  { %3345 = vmatprep.subr.mxu1 %v4676_v1 }
0x1236   :  { %3346 = vmatpush3.msra.mxu1 %v3849_v38 }
0x1237   :  { %3347 = vmatprep.subr.mxu1 %v4676_v1 }
0x1238   :  { %3348 = vmatpush3.msra.mxu1 %v3856_v41  ;;  %v1656_v41 = vsub.f32 1.0, %v3533_v5 }
0x1239   :  { %3349 = vmatprep.subr.mxu1 %v4676_v1 }
0x123a   :  { %3350 = vmatpush3.msra.mxu1 %v3863_v43  ;;  %v1653_v43 = vpop.permute.xlu0 %1652 }
0x123b   :  { %3351 = vmatprep.subr.mxu1 %v4676_v1 }
0x123c   :  { %3352 = vmatpush3.msra.mxu1 %v3889_v50 }
0x123d   :  { %3353 = vmatprep.subr.mxu1 %v4676_v1 }
0x123e   :  { %3354 = vmatpush3.msra.mxu1 %v3896_v51  ;;  %v1655_v51 = vmul.f32 %v3533_v5, %v1653_v43 }
0x123f   :  { %3355 = vmatprep.subr.mxu1 %v4676_v1 }
0x1240   :  { %3356 = vmatpush3.msra.mxu1 %v3903_v52 }
0x1241   :  { %3357 = vmatprep.subr.mxu1 %v4676_v1 }
0x1242   :  { %3358 = vmatpush3.msra.mxu1 %v3908_v53 }
0x1243   :  { %3359 = vmatprep.subr.mxu1 %v4676_v1 }
0x1244   :  { %3360 = vmatpush3.msra.mxu1 %v3915_v54  ;;  %v4308_v54 = vld [vmem:[%s4661_s2 + $0x4] sm:$0x3] }
0x1245   :  { %3361 = vmatprep.subr.mxu1 %v4676_v1 }
0x1246   :  { %3362 = vmatpush3.msra.mxu1 %v3922_v55  ;;  %v1489_v55 = vsub.f32 1.0, %v4308_v54 }
0x1247   :  { %3363 = vmatprep.subr.mxu1 %v4676_v1 }
0x1248   :  { %3364 = vmatpush3.msra.mxu1 %v3929_v56 }
0x1249   :  { %3365 = vmatprep.subr.mxu1 %v4676_v1 }
0x124a   :  { %3366 = vmatpush3.msra.mxu1 %v3936_v57  ;;  %v1668_v57 = vmul.f32 %v1489_v55, %v4241_v2 }
0x124b   :  { %3367 = vmatprep.subr.mxu1 %v4676_v1 }
0x124c   :  { %3368 = vmatpush3.msra.mxu1 %v3943_v58 }
0x124d   :  { %3369 = vmatprep.subr.mxu1 %v4676_v1 }
0x124e   :  { %3370 = vmatpush3.msra.mxu1 %v3950_v59 }
0x12ef   :  { %v1647_v33 = vpop.f32.mrf.mxu1 }
0x12f0   :  { %v1648_v34 = vadd.f32 %v2988_v9, %v1647_v33 }
0x12f1   :  { %v3338_v35 = vpop.f32.mrf.mxu1 }
0x12f2   :  { %3534 = vtanh.f32 %v1648_v34 }
0x12ff   :  { %v3535_v38 = vpop.eup %3534 }
0x1300   :  { %1658 = vrot.lane.b32.xlu1 %v3535_v38, %s3624_s27 }
0x1372   :  { %v1659_v50 = vpop.permute.xlu1 %1658 }
0x1373   :  { %v1661_v52 = vmul.f32 %v1659_v50, %v1656_v41 }
0x1375   :  { %v1662_v53 = vadd.f32 %v1661_v52, %v1655_v51 }
0x1377   :  { %1664 = vrot.lane.b32.xlu0 %v1662_v53, %s3625_s17 }
0x13e9   :  { %v1665_v56 = vpop.permute.xlu0 %1664 }
0x13ea   :  { %v1667_v58 = vmul.f32 %v4308_v54, %v1665_v56 }
0x13ec   :  { %v4315_v59 = vadd.f32 %v1668_v57, %v1667_v58 }
0x13ee   :  { %2993 = vmatmul.mubr.msk.f32.vlgmr.msra.gmra.mxu0 %vm49_vm1, %v4315_v59  ;;  %v2158_v50 = vrot.slane %v4315_v59, 1 }
0x13ef   :  { %3375 = vmatpush3.msra.mxu0 %v3979_v21  ;;  %3376 = vmatprep.mubr.msk.f32.mxu0 %vm3623_vm0, %v4676_v1 }
0x13f0   :  { %3379 = vmatprep.subr.mxu0 %v4676_v1 }
0x14ae   :  { %v1747_v61 = vpop.f32.mrf.mxu0 }
0x14af   :  { %v1753_v16 = vadd.f32 %v1752_v49, %v1747_v61  ;;  %v2213_v61 = vld [vmem:[%s4665_s6 + $0x20] sm:$0xff] }
0x14b1   :  { %3536 = vtanh.f32 %v1753_v16 }
0x14be   :  { %v3537_v62 = vpop.eup %3536 }
0x14bf   :  { %v1756_v20 = vmul.f32 %v3537_v62, %v1755_v17 }
0x14c1   :  { %3372 = vmatmul.mubr.f32.vlgmr.msra.gmra.mxu1 %v1756_v20  ;;  %v2212_v20 = vld [vmem:[%s4665_s6 + $0x10] sm:$0xff] }
0x14c2   :  { %2466 = vmatprep.mubr.f32.mxu1 %v4676_v1 }
0x1581   :  { %v1839_v21 = vpop.f32.mrf.mxu1 }
0x1582   :  { %v1843_v32 = vsel %vm399_vm2, %v1839_v21, -inf }
0x1583   :  { %1844 = vmax.xlane.f32.xlu1 %v1843_v32  ;;  %v3373_v22 = vpop.f32.mrf.mxu1  ;;  %v2211_v32 = vld [vmem:[%s4665_s6] sm:$0xff] }
0x160c   :  { %v1845_v36 = vpop.xlane.xlu1 %1844 }
0x160d   :  { %v1846_v24 = vsub.f32 %v1839_v21, %v1845_v36 }
0x160f   :  { %v1847_v37 = vmul.f32 1.442695, %v1846_v24 }
0x1611   :  { %3538 = vpow2.f32 %v1847_v37 }
0x161e   :  { %v3539_v25 = vpop.eup %3538 }
0x161f   :  { %v1850_v26 = vmul.f32 %v3539_v25, %v1849_v39 }
0x1621   :  { %v1851_v28 = vsel %vm399_vm2, %v1850_v26, 0.0 }
0x1622   :  { %1852 = vadd.xlane.f32.xlu0 %v1851_v28 }
0x16ab   :  { %v1853_v30 = vpop.xlane.xlu0 %1852 }
0x16ac   :  { %3540 = vrcp.f32 %v1853_v30 }
0x16b9   :  { %v3541_v42 = vpop.eup %3540 }
0x16ba   :  { %v1855_v46 = vmul.f32 %v3541_v42, %v1850_v26 }
0x16bc   :  { %2203 = vst.msk [vmem:[#allocation4 + $0x4] sm:$0x3] %vm399_vm2, %v1855_v46  ;;  %v1863_v48 = vrot.slane %v1855_v46, %v3983_v40 }
0x16be   :  { %v1871_v47 = vrot.slane %v1863_v48, %v3983_v40  ;;  %v1864_v0 = vcombine.high %v1863_v48, %v1863_v48 }
0x16c0   :  { %3377 = vmatmul.mubr.msk.f32.vlgmr.msra.gmra.mxu0 %vm438_vm3, %v1871_v47  ;;  %v1878_v44 = vrot.slane %v1864_v0, %v3983_v40  ;;  %v2189_v0 = vmul.f32 %v4315_v59, %v1489_v55  ;;  %v2297_v55 = vld [vmem:[%s4665_s6 + $0x60] sm:$0xff] }
0x16c1   :  { %3380 = vmatpush3.msra.mxu0 %v3991_v60  ;;  %3381 = vmatprep.mubr.msk.f32.mxu0 %vm3623_vm0, %v4676_v1  ;;  %v1749_v60 = vpop.f32.mrf.mxu0 }
0x16c2   :  { %3384 = vmatprep.subr.mxu0 %v4676_v1  ;;  %v2026_v6 = vrot.slane %v1749_v60, 1 }
0x16c4   :  { %3382 = vmatmul.mubr.msk.f32.vlgmr.msra.gmra.mxu0 %vm438_vm3, %v1878_v44 }
0x16c5   :  { %3385 = vmatpush3.msra.mxu0 %v4005_v63  ;;  %3392 = vmatprep.mubr.msk.f32.mxu0 %vm3623_vm0, %v4676_v1 }
0x16c6   :  { %3386 = vmatprep.subr.mxu0 %v4676_v1 }
0x16c7   :  { %3387 = vmatpush3.msra.mxu0 %v4010_v3 }
0x16c8   :  { %3388 = vmatprep.subr.mxu0 %v4676_v1 }
0x16c9   :  { %3389 = vmatpush3.msra.mxu0 %v4017_v10 }
0x16ca   :  { %3390 = vmatprep.subr.mxu0 %v4676_v1 }
0x16cb   :  { %3391 = vmatpush3.msra.mxu0 %v4024_v11 }
0x16cc   :  { %3395 = vmatprep.subr.mxu0 %v4676_v1 }
0x1780   :  { %v4355_v29 = vpop.f32.mrf.mxu0 }
0x1781   :  { %v2029_v63 = vadd.f32 %v4355_v29, %v1749_v60 }
0x1782   :  { %v3378_v2 = vpop.f32.mrf.mxu0 }
0x1783   :  { %v2038_v23 = vadd.f32 %v4035_v14, %v2029_v63  ;;  %v2295_v63 = vld [vmem:[%s4665_s6 + $0x40] sm:$0xff] }
0x1784   :  { %v4359_v3 = vpop.f32.mrf.mxu0  ;;  %v3002_v2 = vld [vmem:[%s4659_s0 + $0x6] sm:$0x3] }
0x1785   :  { %v2997_v45 = vmul.f32 -1.442695, %v2038_v23  ;;  %v2030_v10 = vadd.f32 %v2026_v6, %v4359_v3 }
0x1786   :  { %v3383_v15 = vpop.f32.mrf.mxu0 }
0x1787   :  { %v2039_v31 = vadd.f32 %v4035_v14, %v2030_v10  ;;  %3542 = vpow2.f32 %v2997_v45 }
0x1789   :  { %v2998_v11 = vmul.f32 -1.442695, %v2039_v31 }
0x178b   :  { %3544 = vpow2.f32 %v2998_v11 }
0x1794   :  { %v3543_v7 = vpop.eup %3542 }
0x1795   :  { %v2046_v5 = vadd.f32 1.0, %v3543_v7 }
0x1798   :  { %v3545_v4 = vpop.eup %3544 }
0x1799   :  { %v2047_v8 = vadd.f32 1.0, %v3545_v4  ;;  %v3003_v4 = vld [vmem:[%s4660_s1 + $0x6] sm:$0x3] }
0x179b   :  { %3546 = vrcp.f32 %v2047_v8 }
0x179c   :  { %3548 = vrcp.f32 %v2046_v5 }
0x17a8   :  { %v3547_v9 = vpop.eup %3546 }
0x17a9   :  { %v2054_v33 = vrot.slane %v3547_v9, 7  ;;  %v3549_v34 = vpop.eup %3548  ;;  %v2168_v21 = vsub.f32 1.0, %v3547_v9 }
0x17aa   :  { %v2167_v25 = vsub.f32 1.0, %v3549_v34 }
0x17ab   :  { %v2055_v35 = vsel %vm613_vm4, %v2054_v33, %v3549_v34  ;;  %v2398_v33 = vld [vmem:[%s4665_s6 + $0xb8] sm:$0xff] }
0x17ac   :  { %v2057_v38 = vmul.f32 %v2055_v35, %v4315_v59  ;;  %v2396_v35 = vld [vmem:[%s4665_s6 + $0xa8] sm:$0xff]  ;;  %2426 = vmatprep.subr.mxu1 %v2398_v33 }
0x17ae   :  { %3393 = vmatmul.mubr.msk.f32.vlgmr.msra.gmra.mxu0 %vm49_vm1, %v2057_v38  ;;  %v2395_v38 = vld [vmem:[%s4665_s6 + $0xa0] sm:$0xff] }
0x17af   :  { %3403 = vmatprep.mubr.msk.f32.mxu0 %vm3623_vm0, %v4676_v1 }
0x186e   :  { %v2131_v14 = vpop.f32.mrf.mxu0 }
0x186f   :  { %v2136_v41 = vrot.slane %v2131_v14, 1  ;;  %2137 = vrot.lane.b32.xlu1 %v2131_v14, %s3627_s26 }
0x1870   :  { %v3394_v43 = vpop.f32.mrf.mxu0 }
0x1871   :  { %2139 = vrot.lane.b32.xlu0 %v2136_v41, %s3627_s26  ;;  %v2394_v41 = vld [vmem:[%s4665_s6 + $0x98] sm:$0xff]  ;;  %v2393_v43 = vld [vmem:[%s4665_s6 + $0x90] sm:$0xff] }
0x1873   :  { %2151 = vrot.lane.b32.xlu1 %v4060_v18, %s3627_s26  ;;  %v2214_v18 = vld [vmem:[%s4665_s6 + $0x30] sm:$0xff] }
0x1874   :  { %3396 = vmatpush3.msra.mxu0 %v2214_v18  ;;  %v2490_v18 = vld [vmem:[%s4666_s7 + $0x60] sm:$0xff] }
0x1875   :  { %2161 = vrot.lane.b32.xlu0 %v2158_v50, %s3624_s27  ;;  %3397 = vmatprep.subr.mxu0 %v4676_v1  ;;  %v2392_v50 = vld [vmem:[%s4665_s6 + $0x88] sm:$0xff] }
0x1876   :  { %3398 = vmatpush3.msra.mxu0 %v2213_v61 }
0x1877   :  { %3399 = vmatprep.subr.mxu0 %v4676_v1 }
0x1878   :  { %3400 = vmatpush3.msra.mxu0 %v2212_v20  ;;  %v2488_v20 = vld [vmem:[%s4666_s7 + $0x50] sm:$0xff] }
0x1879   :  { %2159 = vrot.lane.b32.xlu0 %v4315_v59, %s3624_s27  ;;  %3401 = vmatprep.subr.mxu0 %v4676_v1  ;;  %v2296_v59 = vld [vmem:[%s4665_s6 + $0x50] sm:$0xff] }
0x187a   :  { %3402 = vmatpush3.msra.mxu0 %v2211_v32 }
0x187b   :  { %3406 = vmatprep.subr.mxu0 %v4676_v1 }
0x18e1   :  { %v2138_v51 = vpop.permute.xlu1 %2137 }
0x18e2   :  { %v2143_v58 = vadd.f32 %v2138_v51, %v4355_v29  ;;  %v2391_v51 = vld [vmem:[%s4665_s6 + $0x80] sm:$0xff] }
0x18e3   :  { %v2140_v52 = vpop.permute.xlu0 %2139 }
0x18e4   :  { %v2144_v53 = vadd.f32 %v2140_v52, %v4359_v3  ;;  %v2493_v52 = vld [vmem:[%s4666_s7 + $0x78] sm:$0xff] }
0x18e5   :  { %v2152_v56 = vpop.permute.xlu1 %2151 }
0x18e6   :  { %v2155_v57 = vadd.f32 %v2152_v56, %v2144_v53  ;;  %v2154_v49 = vadd.f32 %v2152_v56, %v2143_v58  ;;  %v2492_v53 = vld [vmem:[%s4666_s7 + $0x70] sm:$0xff]  ;;  %v2491_v56 = vld [vmem:[%s4666_s7 + $0x68] sm:$0xff] }
0x18e7   :  { %v2162_v62 = vpop.permute.xlu0 %2161 }
0x18e8   :  { %3550 = vtanh.f32 %v2155_v57  ;;  %v2166_v36 = vmul.f32 %v3547_v9, %v2162_v62 }
0x18e9   :  { %3552 = vtanh.f32 %v2154_v49 }
0x18eb   :  { %v2160_v37 = vpop.permute.xlu0 %2159 }
0x18ec   :  { %v2165_v28 = vmul.f32 %v3549_v34, %v2160_v37  ;;  %v2397_v34 = vld [vmem:[%s4665_s6 + $0xb0] sm:$0xff] }
0x18ed   :  { %2427 = vmatpush1.msra.mxu1 %v2397_v34 }
0x18ee   :  { %2428 = vmatprep.subr.mxu1 %v2396_v35 }
0x18ef   :  { %2429 = vmatpush1.msra.mxu1 %v2395_v38  ;;  %v2601_v38 = vld [vmem:[%s4663_s4 + $0x8] sm:$0xff] }
0x18f0   :  { %2430 = vmatprep.subr.mxu1 %v2394_v41 }
0x18f1   :  { %2431 = vmatpush1.msra.mxu1 %v2393_v43  ;;  %v2782_v43 = vld [vmem:[%s4665_s6 + $0xf0] sm:$0xff] }
0x18f2   :  { %2432 = vmatprep.subr.mxu1 %v2392_v50  ;;  %v2781_v50 = vld [vmem:[%s4665_s6 + $0xe0] sm:$0xff] }
0x18f3   :  { %2433 = vmatpush1.msra.mxu1 %v2391_v51  ;;  %v2779_v51 = vld [vmem:[%s4665_s6 + $0xc0] sm:$0xff] }
0x18f4   :  { %3452 = vmatprep.subr.mxu1 %v4676_v1 }
0x18f5   :  { %v3551_v16 = vpop.eup %3550 }
0x18f6   :  { %2173 = vrot.lane.b32.xlu1 %v3551_v16, %s3625_s17  ;;  %v3553_v17 = vpop.eup %3552 }
0x18fa   :  { %2171 = vrot.lane.b32.xlu1 %v3553_v17, %s3625_s17  ;;  %v2489_v17 = vld [vmem:[%s4666_s7 + $0x58] sm:$0xff] }
0x1968   :  { %v2174_v22 = vpop.permute.xlu1 %2173 }
0x1969   :  { %v2178_v24 = vmul.f32 %v2174_v22, %v2168_v21  ;;  %v4495_v21 = vld [vmem:[%s4661_s2 + $0x6] sm:$0x3] }
0x196a   :  { %v2210_v32 = vsub.f32 1.0, %v4495_v21 }
0x196b   :  { %v2180_v39 = vadd.f32 %v2178_v24, %v2166_v36 }
0x196c   :  { %v2172_v26 = vpop.permute.xlu1 %2171 }
0x196d   :  { %v2177_v30 = vmul.f32 %v2172_v26, %v2167_v25  ;;  %v2183_v42 = vrot.slane %v2180_v39, 7  ;;  %v2487_v39 = vld [vmem:[%s4666_s7 + $0x48] sm:$0xff]  ;;  %v2486_v25 = vld [vmem:[%s4666_s7 + $0x40] sm:$0xff]  ;;  %v2485_v26 = vld [vmem:[%s4666_s7 + $0x38] sm:$0xff] }
0x196f   :  { %v2179_v46 = vadd.f32 %v2177_v30, %v2165_v28  ;;  %v2484_v28 = vld [vmem:[%s4666_s7 + $0x30] sm:$0xff]  ;;  %v2483_v30 = vld [vmem:[%s4666_s7 + $0x28] sm:$0xff] }
0x1971   :  { %v2184_v48 = vsel %vm613_vm4, %v2183_v42, %v2179_v46  ;;  %v2482_v42 = vld [vmem:[%s4666_s7 + $0x20] sm:$0xff]  ;;  %v2481_v46 = vld [vmem:[%s4666_s7 + $0x18] sm:$0xff] }
0x1972   :  { %2185 = vrot.lane.b32.xlu0 %v2184_v48, %s3625_s17  ;;  %v2480_v48 = vld [vmem:[%s4666_s7 + $0x10] sm:$0xff] }
0x19e4   :  { %v2186_v47 = vpop.permute.xlu0 %2185 }
0x19e5   :  { %v2188_v44 = vmul.f32 %v4308_v54, %v2186_v47  ;;  %v2298_v54 = vld [vmem:[%s4665_s6 + $0x70] sm:$0xff]  ;;  %v2479_v47 = vld [vmem:[%s4666_s7 + $0x8] sm:$0xff] }
0x19e7   :  { %v4402_v60 = vadd.f32 %v2189_v0, %v2188_v44  ;;  %v2478_v0 = vld [vmem:[%s4666_s7] sm:$0xff] }
0x19e8   :  { %v2473_v44 = vld [vmem:[%s4662_s3] sm:$0x3] }
0x19e9   :  { %2373 = vrot.lane.b32.xlu1 %v4402_v60, %s3624_s27  ;;  %3404 = vmatmul.mubr.msk.f32.vlgmr.msra.gmra.mxu0 %vm49_vm1, %v4402_v60  ;;  %3001 = vst.msk [vmem:[%s4669_s10 + $0x4] sm:$0x3] %vm750_vm5, %v4402_v60  ;;  %v2389_v36 = vmul.f32 %v2210_v32, %v4402_v60 }
0x19ea   :  { %3414 = vmatprep.mubr.msk.f32.mxu0 %vm3623_vm0, %v4676_v1  ;;  %3407 = vmatpush3.msra.mxu0 %v2298_v54 }
0x19eb   :  { %3408 = vmatprep.subr.mxu0 %v4676_v1 }
0x19ec   :  { %3409 = vmatpush3.msra.mxu0 %v2297_v55  ;;  %v2476_v55 = vld [vmem:[%s4662_s3 + $0x2] sm:$0x3] }
0x19ed   :  { %3410 = vmatprep.subr.mxu0 %v4676_v1 }
0x19ee   :  { %3411 = vmatpush3.msra.mxu0 %v2296_v59 }
0x19ef   :  { %3412 = vmatprep.subr.mxu0 %v4676_v1 }
0x19f0   :  { %3413 = vmatpush3.msra.mxu0 %v2295_v63 }
0x19f1   :  { %3417 = vmatprep.subr.mxu0 %v4676_v1 }
0x1a5b   :  { %v2374_v58 = vpop.permute.xlu1 %2373 }
0x1aa9   :  { %v2284_v6 = vpop.f32.mrf.mxu0 }
0x1aaa   :  { %v2285_v23 = vadd.f32 %v3002_v2, %v2284_v6 }
0x1aab   :  { %v3405_v45 = vpop.f32.mrf.mxu0 }
0x1aac   :  { %v3006_v10 = vmul.f32 -1.442695, %v2285_v23 }
0x1aae   :  { %3554 = vpow2.f32 %v3006_v10 }
0x1abb   :  { %v3555_v15 = vpop.eup %3554 }
0x1abc   :  { %v2291_v31 = vadd.f32 1.0, %v3555_v15 }
0x1abe   :  { %3556 = vrcp.f32 %v2291_v31  ;;  %v2570_v31 = vld [vmem:[%s4662_s3 + $0x4] sm:$0x3] }
0x1acb   :  { %v3557_v11 = vpop.eup %3556 }
0x1acc   :  { %v2294_v7 = vmul.f32 %v3557_v11, %v4402_v60  ;;  %v2377_v57 = vsub.f32 1.0, %v3557_v11  ;;  %v2376_v61 = vmul.f32 %v3557_v11, %v2374_v58 }
0x1ace   :  { %3415 = vmatmul.mubr.msk.f32.vlgmr.msra.gmra.mxu0 %vm49_vm1, %v2294_v7 }
0x1acf   :  { %3449 = vmatprep.mubr.msk.f32.mxu0 %vm3623_vm0, %v4676_v1  ;;  %3418 = vmatpush3.msra.mxu0 %v2493_v52 }
0x1ad0   :  { %3419 = vmatprep.subr.mxu0 %v4676_v1 }
0x1ad1   :  { %3420 = vmatpush3.msra.mxu0 %v2492_v53 }
0x1ad2   :  { %3421 = vmatprep.subr.mxu0 %v4676_v1 }
0x1ad3   :  { %3422 = vmatpush3.msra.mxu0 %v2491_v56  ;;  %v3011_v56 = vld [vmem:[%s4667_s8] ss:$0 sm:$0xff] }
0x1ad4   :  { %3423 = vmatprep.subr.mxu0 %v4676_v1 }
0x1ad5   :  { %3424 = vmatpush3.msra.mxu0 %v2490_v18 }
0x1ad6   :  { %3425 = vmatprep.subr.mxu0 %v4676_v1 }
0x1ad7   :  { %3426 = vmatpush3.msra.mxu0 %v2489_v17 }
0x1ad8   :  { %3427 = vmatprep.subr.mxu0 %v4676_v1 }
0x1ad9   :  { %3428 = vmatpush3.msra.mxu0 %v2488_v20 }
0x1ada   :  { %3429 = vmatprep.subr.mxu0 %v4676_v1 }
0x1adb   :  { %3430 = vmatpush3.msra.mxu0 %v2487_v39 }
0x1adc   :  { %3431 = vmatprep.subr.mxu0 %v4676_v1 }
0x1add   :  { %3432 = vmatpush3.msra.mxu0 %v2486_v25 }
0x1ade   :  { %3433 = vmatprep.subr.mxu0 %v4676_v1 }
0x1adf   :  { %3434 = vmatpush3.msra.mxu0 %v2485_v26 }
0x1ae0   :  { %3435 = vmatprep.subr.mxu0 %v4676_v1 }
0x1ae1   :  { %3436 = vmatpush3.msra.mxu0 %v2484_v28 }
0x1ae2   :  { %3437 = vmatprep.subr.mxu0 %v4676_v1 }
0x1ae3   :  { %3438 = vmatpush3.msra.mxu0 %v2483_v30 }
0x1ae4   :  { %3439 = vmatprep.subr.mxu0 %v4676_v1 }
0x1ae5   :  { %3440 = vmatpush3.msra.mxu0 %v2482_v42 }
0x1ae6   :  { %3441 = vmatprep.subr.mxu0 %v4676_v1 }
0x1ae7   :  { %3442 = vmatpush3.msra.mxu0 %v2481_v46 }
0x1ae8   :  { %3443 = vmatprep.subr.mxu0 %v4676_v1 }
0x1ae9   :  { %3444 = vmatpush3.msra.mxu0 %v2480_v48 }
0x1aea   :  { %3445 = vmatprep.subr.mxu0 %v4676_v1 }
0x1aeb   :  { %3446 = vmatpush3.msra.mxu0 %v2479_v47 }
0x1aec   :  { %3447 = vmatprep.subr.mxu0 %v4676_v1 }
0x1aed   :  { %3448 = vmatpush3.msra.mxu0 %v2478_v0 }
0x1b8e   :  { %v2368_v5 = vpop.f32.mrf.mxu0 }
0x1b8f   :  { %v2369_v8 = vadd.f32 %v3003_v4, %v2368_v5  ;;  %v2600_v5 = vld [vmem:[%s4663_s4] sm:$0xff] }
0x1b90   :  { %v3416_v9 = vpop.f32.mrf.mxu0 }
0x1b91   :  { %3558 = vtanh.f32 %v2369_v8 }
0x1b9e   :  { %v3559_v14 = vpop.eup %3558 }
0x1b9f   :  { %2379 = vrot.lane.b32.xlu0 %v3559_v14, %s3624_s27 }
0x1c11   :  { %v2380_v49 = vpop.permute.xlu0 %2379 }
0x1c12   :  { %v2382_v16 = vmul.f32 %v2380_v49, %v2377_v57 }
0x1c14   :  { %v2383_v62 = vadd.f32 %v2382_v16, %v2376_v61 }
0x1c16   :  { %2385 = vrot.lane.b32.xlu1 %v2383_v62, %s3625_s17 }
0x1c88   :  { %v2386_v22 = vpop.permute.xlu1 %2385 }
0x1c89   :  { %v2388_v24 = vmul.f32 %v4495_v21, %v2386_v22 }
0x1c8b   :  { %v4502_v37 = vadd.f32 %v2389_v36, %v2388_v24 }
0x1c8d   :  { %3008 = vmatmul.mubr.msk.f32.vlgmr.msra.gmra.mxu1 %vm49_vm1, %v4502_v37  ;;  %v2879_v0 = vrot.slane %v4502_v37, 1 }
0x1c8e   :  { %3454 = vmatprep.mubr.msk.f32.mxu1 %vm3623_vm0, %v4676_v1  ;;  %3453 = vmatpush3.msra.mxu1 %v2600_v5 }
0x1c8f   :  { %3457 = vmatprep.subr.mxu1 %v4676_v1 }
0x1d4d   :  { %v2468_v60 = vpop.f32.mrf.mxu1 }
0x1d4e   :  { %v2474_v54 = vadd.f32 %v2473_v44, %v2468_v60  ;;  %v3015_v44 = vld [vmem:[%s4668_s9] ss:$0 sm:$0xff]  ;;  %v1474_v60 = vrot.slane %v4206_v27, 7  ;;  %s3628_s9 = smov [#allocation4]  }
0x1d4f   :  { %v2470_v52 = vpop.f32.mrf.mxu1 }
0x1d50   :  { %3560 = vtanh.f32 %v2474_v54  ;;  %v2747_v49 = vrot.slane %v2470_v52, 1  ;;  %v1475_v54 = vsel %vm613_vm4, %v1474_v60, %v4202_v12 }
0x1d5d   :  { %v3561_v59 = vpop.eup %3560 }
0x1d5e   :  { %v2477_v63 = vmul.f32 %v3561_v59, %v2476_v55 }
0x1d60   :  { %3450 = vmatmul.mubr.f32.vlgmr.msra.gmra.mxu0 %v2477_v63 }
0x1e20   :  { %v2560_v2 = vpop.f32.mrf.mxu0 }
0x1e21   :  { %v2564_v6 = vsel %vm399_vm2, %v2560_v2, -inf }
0x1e22   :  { %2565 = vmax.xlane.f32.xlu0 %v2564_v6  ;;  %v3451_v23 = vpop.f32.mrf.mxu0 }
0x1eab   :  { %v2566_v45 = vpop.xlane.xlu0 %2565 }
0x1eac   :  { %v2567_v10 = vsub.f32 %v2560_v2, %v2566_v45 }
0x1eae   :  { %v2568_v15 = vmul.f32 1.442695, %v2567_v10 }
0x1eb0   :  { %3562 = vpow2.f32 %v2568_v15 }
0x1ebd   :  { %v3563_v11 = vpop.eup %3562 }
0x1ebe   :  { %v2571_v7 = vmul.f32 %v3563_v11, %v2570_v31  ;;  %v754_v11 = vrot.slane %v4039_v19, 7 }
0x1ec0   :  { %v2572_v4 = vsel %vm399_vm2, %v2571_v7, 0.0 }
0x1ec1   :  { %2573 = vadd.xlane.f32.xlu1 %v2572_v4  ;;  %v755_v4 = vsel %vm613_vm4, %v754_v11, %v4030_v13 }
0x1f4a   :  { %v2574_v8 = vpop.xlane.xlu1 %2573 }
0x1f4b   :  { %3564 = vrcp.f32 %v2574_v8 }
0x1f58   :  { %v3565_v9 = vpop.eup %3564 }
0x1f59   :  { %v2576_v33 = vmul.f32 %v3565_v9, %v2571_v7  ;;  %v2195_v7 = vrot.slane %v4359_v3, 7 }
0x1f5b   :  { %2924 = vst.msk [vmem:[#allocation4 + $0x6] sm:$0x3] %vm399_vm2, %v2576_v33  ;;  %v2584_v34 = vrot.slane %v2576_v33, %v3983_v40  ;;  %v2196_v5 = vsel %vm613_vm4, %v2195_v7, %v4355_v29 }
0x1f5d   :  { %v2592_v35 = vrot.slane %v2584_v34, %v3983_v40  ;;  %v2585_v14 = vcombine.high %v2584_v34, %v2584_v34 }
0x1f5f   :  { %3455 = vmatmul.mubr.msk.f32.vlgmr.msra.gmra.mxu1 %vm438_vm3, %v2592_v35  ;;  %v2599_v41 = vrot.slane %v2585_v14, %v3983_v40  ;;  %v2780_v40 = vld [vmem:[%s4665_s6 + $0xd0] sm:$0xff] }
0x1f60   :  { %3458 = vmatpush3.msra.mxu1 %v2601_v38  ;;  %3459 = vmatprep.mubr.msk.f32.mxu1 %vm3623_vm0, %v4676_v1 }
0x1f61   :  { %3462 = vmatprep.subr.mxu1 %v4676_v1 }
0x1f63   :  { %3460 = vmatmul.mubr.msk.f32.vlgmr.msra.gmra.mxu1 %vm438_vm3, %v2599_v41 }
0x1f64   :  { %3470 = vmatprep.mubr.msk.f32.mxu1 %vm3623_vm0, %v4676_v1  ;;  %3463 = vmatpush3.msra.mxu1 %v2782_v43 }
0x1f65   :  { %3464 = vmatprep.subr.mxu1 %v4676_v1 }
0x1f66   :  { %3465 = vmatpush3.msra.mxu1 %v2781_v50 }
0x1f67   :  { %3466 = vmatprep.subr.mxu1 %v4676_v1 }
0x1f68   :  { %3467 = vmatpush3.msra.mxu1 %v2780_v40 }
0x1f69   :  { %3468 = vmatprep.subr.mxu1 %v4676_v1 }
0x1f6a   :  { %3469 = vmatpush3.msra.mxu1 %v2779_v51 }
0x201f   :  { %v4591_v53 = vpop.f32.mrf.mxu1 }
0x2020   :  { %v2750_v57 = vadd.f32 %v4591_v53, %v2470_v52 }
0x2021   :  { %v3456_v58 = vpop.f32.mrf.mxu1 }
0x2022   :  { %v2759_v18 = vadd.f32 %v3011_v56, %v2750_v57 }
0x2023   :  { %v4597_v61 = vpop.f32.mrf.mxu1 }
0x2024   :  { %v3012_v16 = vmul.f32 -1.442695, %v2759_v18  ;;  %v2751_v17 = vadd.f32 %v2747_v49, %v4597_v61 }
0x2025   :  { %v3461_v62 = vpop.f32.mrf.mxu1 }
0x2026   :  { %v2760_v1 = vadd.f32 %v3011_v56, %v2751_v17  ;;  %3566 = vpow2.f32 %v3012_v16 }
0x2028   :  { %v3013_v20 = vmul.f32 -1.442695, %v2760_v1 }
0x202a   :  { %3568 = vpow2.f32 %v3013_v20 }
0x2033   :  { %v3567_v22 = vpop.eup %3566 }
0x2034   :  { %v2767_v24 = vadd.f32 1.0, %v3567_v22 }
0x2037   :  { %v3569_v36 = vpop.eup %3568 }
0x2038   :  { %v2768_v39 = vadd.f32 1.0, %v3569_v36 }
0x203a   :  { %3570 = vrcp.f32 %v2768_v39 }
0x203b   :  { %3572 = vrcp.f32 %v2767_v24 }
0x2047   :  { %v3571_v25 = vpop.eup %3570 }
0x2048   :  { %v2775_v26 = vrot.slane %v3571_v25, 7  ;;  %v3573_v28 = vpop.eup %3572  ;;  %v2889_v8 = vsub.f32 1.0, %v3571_v25 }
0x2049   :  { %v2888_v35 = vsub.f32 1.0, %v3573_v28 }
0x204a   :  { %v2776_v30 = vsel %vm613_vm4, %v2775_v26, %v3573_v28 }
0x204b   :  { %v2778_v42 = vmul.f32 %v2776_v30, %v4502_v37 }
0x204d   :  { %3471 = vmatmul.mubr.msk.f32.vlgmr.msra.gmra.mxu1 %vm49_vm1, %v2778_v42 }
0x210d   :  { %v2852_v46 = vpop.f32.mrf.mxu1 }
0x210e   :  { %v2857_v48 = vrot.slane %v2852_v46, 1  ;;  %2858 = vrot.lane.b32.xlu1 %v2852_v46, %s3627_s26 }
0x210f   :  { %v3472_v47 = vpop.f32.mrf.mxu1 }
0x2110   :  { %2860 = vrot.lane.b32.xlu0 %v2857_v48, %s3627_s26 }
0x2112   :  { %2882 = vrot.lane.b32.xlu1 %v2879_v0, %s3624_s27 }
0x2114   :  { %2872 = vrot.lane.b32.xlu0 %v3015_v44, %s3627_s26  ;;  %s2944_s26 = sshll.u32 %s3628_s9, 4  ;;  %s2945_s26 = int_to_ptr.vmem [resolvable:$true] %s2944_s26 }
0x2115   :  { %s3578_s23 = scalar_lea.vmem %s2945_s26, 128  ;;  %p3583_p1 = scmp.lt.s32.totalorder %s2945_s26, %s2945_s26 }
0x2116   :  { %2880 = vrot.lane.b32.xlu1 %v4502_v37, %s3624_s27  ;;  %p3579_p0 = scmp.ne.s32.totalorder %s2945_s26, %s3578_s23  ;;  %p3584_p2 = scmp.lt.s32.totalorder %s3578_s23, %s3578_s23 }
0x2118   :  { %p3585_p3 = por %p3584_p2, %p3583_p1 }
0x211a   :  { %1476 = vrot.lane.b32.xlu1 %v1475_v54, %s3624_s27  ;;  %p3586_p4 = pnand %p3585_p3, %p3579_p0 }
0x2180   :  { %v2859_v55 = vpop.permute.xlu1 %2858 }
0x2181   :  { %v2864_v45 = vadd.f32 %v2859_v55, %v4591_v53 }
0x2182   :  { %v2861_v59 = vpop.permute.xlu0 %2860 }
0x2183   :  { %v2865_v2 = vadd.f32 %v2861_v59, %v4597_v61 }
0x2184   :  { %v2883_v63 = vpop.permute.xlu1 %2882 }
0x2185   :  { %v2887_v33 = vmul.f32 %v3571_v25, %v2883_v63 }
0x2186   :  { %v2873_v6 = vpop.permute.xlu0 %2872 }
0x2187   :  { %v2876_v23 = vadd.f32 %v2873_v6, %v2865_v2  ;;  %v2875_v15 = vadd.f32 %v2873_v6, %v2864_v45 }
0x2188   :  { %v2881_v10 = vpop.permute.xlu1 %2880 }
0x2189   :  { %3574 = vtanh.f32 %v2876_v23 }
0x218a   :  { %3576 = vtanh.f32 %v2875_v15 }
0x218c   :  { %v1477_v27 = vpop.permute.xlu1 %1476 }
0x218d   :  { %1480 = vst.msk [vmem:[#allocation2 + $0x2] sm:$0x3] %vm759_vm6, %v1477_v27 }
0x2196   :  { %v3575_v12 = vpop.eup %3574 }
0x2197   :  { %2894 = vrot.lane.b32.xlu0 %v3575_v12, %s3625_s17  ;;  %v3577_v31 = vpop.eup %3576 }
0x219b   :  { %2892 = vrot.lane.b32.xlu0 %v3577_v31, %s3625_s17 }
0x219f   :  { %756 = vrot.lane.b32.xlu0 %v755_v4, %s3624_s27 }
0x21a3   :  { %2197 = vrot.lane.b32.xlu0 %v2196_v5, %s3624_s27 }
0x2209   :  { %v2895_v9 = vpop.permute.xlu0 %2894 }
0x220a   :  { %v2899_v19 = vmul.f32 %v2895_v9, %v2889_v8 }
0x220c   :  { %v2901_v34 = vadd.f32 %v2899_v19, %v2887_v33 }
0x220d   :  { %3589 = shalt.err (!%p3586_p4)
}
0x220e   :  { %s3629_s24 = smov 2   ;;  %v2893_v13 = vpop.permute.xlu0 %2892  ;;  %v2886_v29 = vmul.f32 %v3573_v28, %v2881_v10  ;;  %v2904_v38 = vrot.slane %v2901_v34, 7  ;;  %v2916_v43 = vrot.slane %v4597_v61, 7  ;;  %v2910_v56 = vmul.f32 %v4502_v37, %v2210_v32 }
0x220f   :  { %2950 = dma.vmem_to_hbm [thread:$0]  %s2945_s26, 128, %s4671_s12, [#allocation5], %s3624_s27, %s3624_s27, %s3629_s24   ;;  %v2898_v3 = vmul.f32 %v2893_v13, %v2888_v35 }
0x2210   :  { %v2917_v51 = vsel %vm613_vm4, %v2916_v43, %v4591_v53  ;;  %s3630_s12 = smov [#allocation2]  }
0x2211   :  { %v2900_v14 = vadd.f32 %v2898_v3, %v2886_v29  ;;  %s2932_s28 = sshll.u32 %s3630_s12, 4  ;;  %s2933_s28 = int_to_ptr.vmem [resolvable:$true] %s2932_s28 }
0x2212   :  { %v757_v41 = vpop.permute.xlu0 %756  ;;  %s3598_s7 = scalar_lea.vmem %s2933_s28, 128  ;;  %p3603_p6 = scmp.lt.s32.totalorder %s2933_s28, %s2933_s28 }
0x2213   :  { %760 = vst.msk [vmem:[#allocation2] sm:$0x3] %vm759_vm6, %v757_v41  ;;  %v2905_v50 = vsel %vm613_vm4, %v2904_v38, %v2900_v14  ;;  %p3599_p5 = scmp.ne.s32.totalorder %s2933_s28, %s3598_s7  ;;  %p3604_p7 = scmp.lt.s32.totalorder %s3598_s7, %s3598_s7 }
0x2214   :  { %2906 = vrot.lane.b32.xlu1 %v2905_v50, %s3625_s17 }
0x2215   :  { %p3605_p8 = por %p3604_p7, %p3603_p6 }
0x2216   :  { %v2198_v40 = vpop.permute.xlu0 %2197 }
0x2217   :  { %2201 = vst.msk [vmem:[#allocation2 + $0x4] sm:$0x3] %vm759_vm6, %v2198_v40  ;;  %p3606_p9 = pnand %p3605_p8, %p3599_p5 }
0x2218   :  { %2918 = vrot.lane.b32.xlu1 %v2917_v51, %s3624_s27 }
0x2286   :  { %v2907_v52 = vpop.permute.xlu1 %2906 }
0x2287   :  { %v2909_v57 = vmul.f32 %v4495_v21, %v2907_v52 }
0x2289   :  { %v2911_v58 = vadd.f32 %v2910_v56, %v2909_v57 }
0x228a   :  { %v2919_v49 = vpop.permute.xlu1 %2918 }
0x228b   :  { %3016 = vst.msk [vmem:[%s4669_s10 + $0x6] sm:$0x3] %vm750_vm5, %v2911_v58 }
0x228c   :  { %2922 = vst.msk [vmem:[#allocation2 + $0x6] sm:$0x3] %vm759_vm6, %v2919_v49 }
0x228d   :  { %3609 = shalt.err (!%p3606_p9)
}
0x228e   :  { %2938 = dma.vmem_to_hbm [thread:$0]  %s2933_s28, 128, %s4670_s11, [#allocation3], %s3624_s27, %s3624_s27, %s3629_s24  }
0x228f   :  { %3618 = dma.done.wait [#allocation3], 128  }
0x2290   :  { %3619 = vsyncadd [#allocation3], 4294967168 }
0x2291   :  { %3620 = dma.done.wait [#allocation5], 128  }
0x2292   :  { %3621 = vsyncadd [#allocation5], 4294967168 }
0x2293   :  { %2959 = vsyncpa [#allocation3], 1 }
0x2294   :  { %2960 = vsyncpa [#allocation5], 1 }

</bundles_post_ra>
